<compile_context>
chip_gen: v6e
topology: v6e:2x2x1
jax: 0.10.0
libtpu: 0.0.40
codegen_flags: <defaults>
</compile_context>

<pallas_src>
import math
import numpy as np
import jax
import jax.numpy as jnp
from jax.experimental import pallas as pl
from jax.experimental.pallas import tpu as pltpu


# --------------------------------------------------------------------------
# Host-side precomputation (replaces sympy / scipy symbolic machinery)
# --------------------------------------------------------------------------
def _sph_jn_np(order, x):
    """Spherical Bessel j_order(x) via upward recurrence (float64, host)."""
    x = np.asarray(x, dtype=np.float64)
    sin_x, cos_x = np.sin(x), np.cos(x)
    j0 = sin_x / x
    if order == 0:
        return j0
    j1 = sin_x / (x * x) - cos_x / x
    if order == 1:
        return j1
    jm1, jc = j0, j1
    for m in range(1, order):
        jnext = (2.0 * m + 1.0) / x * jc - jm1
        jm1, jc = jc, jnext
    return jc


def _bisect_zero(order, a, b, iters=200):
    """Zero of j_order in [a, b] by bisection (replaces scipy.brentq)."""
    fa = float(_sph_jn_np(order, a))
    for _ in range(iters):
        m = 0.5 * (a + b)
        fm = float(_sph_jn_np(order, m))
        if fa * fm <= 0.0:
            b = m
        else:
            a, fa = m, fm
    return 0.5 * (a + b)


def _jn_zeros(n, k):
    """First k positive zeros of j_0..j_{n-1} (mirrors Jn_zeros)."""
    zerosj = np.zeros((n, k), dtype=np.float64)
    zerosj[0] = np.arange(1, k + 1) * np.pi
    points = np.arange(1, k + n) * np.pi
    racines = np.zeros(k + n - 1, dtype=np.float64)
    for i in range(1, n):
        for j in range(k + n - 1 - i):
            racines[j] = _bisect_zero(i, points[j], points[j + 1])
        points = racines.copy()
        zerosj[i][:k] = racines[:k]
    return zerosj


def _bessel_consts(n, k):
    """zeros z_{i,j} and normalizers 1/sqrt(0.5*j_{i+1}(z)^2) (mirrors bessel_basis)."""
    zeros = _jn_zeros(n, k)
    norm = np.zeros((n, k), dtype=np.float64)
    for i in range(n):
        for j in range(k):
            norm[i, j] = 1.0 / math.sqrt(0.5 * float(_sph_jn_np(i + 1, zeros[i, j])) ** 2)
    return zeros.astype(np.float32), norm.astype(np.float32)


def _sph_prefactor(l, m):
    return math.sqrt((2 * l + 1) * math.factorial(l - abs(m)) /
                     (4.0 * math.pi * math.factorial(l + abs(m))))


def _cdiv(a, b):
    return -(-a // b)


# --------------------------------------------------------------------------
# Pallas kernel (lane-dense: triplets on lanes, features on sublanes)
# --------------------------------------------------------------------------
def _make_kernel(n, k, cutoff):
    inv_cutoff = 1.0 / float(cutoff)
    sqrt2 = math.sqrt(2.0)

    def _scaled(coef, vec, p):
        # coef: python float, vec: (1,TT) array, p: python float OR (1,TT) array
        if isinstance(p, (int, float)):
            return (coef * p) * vec
        return (coef * vec) * p

    def kernel(bconst_ref, dist_ref, angle_ref, phi_ref, o_ref):
        x = dist_ref[...] * inv_cutoff          # (1, TT)   (dist > 0 assumed)
        theta = angle_ref[...]                  # (1, TT)
        ph = phi_ref[...]                       # (1, TT)

        # ---- radial spherical-Bessel basis: one (k, TT) block per order --------
        rbf_blocks = []
        for i in range(n):
            z_i = bconst_ref[i * k:(i + 1) * k, :]             # (k, 1) zeros
            nm_i = bconst_ref[(n + i) * k:(n + i + 1) * k, :]  # (k, 1) normalizers
            t = z_i * x                                        # (k, TT)
            sin_t = jnp.sin(t)
            inv_t = 1.0 / t                    # single division per block, reused
            jc = sin_t * inv_t                 # j0
            if i >= 1:
                cos_t = jnp.cos(t)
                jm1, jc = jc, (jc - cos_t) * inv_t             # j1
                for m in range(1, i):
                    jm1, jc = jc, (2.0 * m + 1.0) * inv_t * jc - jm1
            rbf_blocks.append(jc * nm_i)                       # (k, TT)

        # ---- real spherical harmonics (zero_m_only=False) ----------------------
        ct = jnp.cos(theta)
        st = jnp.sin(theta)

        # associated Legendre in cos(theta); the sin^m(theta) factor is carried by C/S.
        # P(0,0) and all P(m,m) stay Python floats (constant-folded).
        P = {(0, 0): 1.0}
        if n > 1:
            P[(1, 0)] = ct
        for l in range(2, n):
            P[(l, 0)] = ((2 * l - 1) * ct * P[(l - 1, 0)]
                         - (l - 1) * P[(l - 2, 0)]) * (1.0 / l)
        for m in range(1, n):
            P[(m, m)] = float(1 - 2 * m) * P[(m - 1, m - 1)]
            if m + 1 < n:
                P[(m + 1, m)] = (2 * m + 1) * ct * P[(m, m)]
            for l in range(m + 2, n):
                P[(l, m)] = ((2 * l - 1) * ct * P[(l - 1, m)]
                             - (m + l - 1) * P[(l - 2, m)]) * (1.0 / (l - m))

        # C_m = sin^m(theta) cos(m phi),  S_m = sin^m(theta) sin(m phi)
        C, S = {}, {}
        if n > 1:
            sx = st * jnp.cos(ph)
            sy = st * jnp.sin(ph)
            C[1], S[1] = sx, sy
            for m in range(2, n):
                C[m] = sx * C[m - 1] - sy * S[m - 1]
                S[m] = sx * S[m - 1] + sy * C[m - 1]

        # flat column order: i=0 constant, then per i>=1: [m=0, m=1..i (C), m=i..1 (S)]
        cols = [_sph_prefactor(0, 0)]                      # python float, folded below
        for i in range(1, n):
            cols.append(_scaled(_sph_prefactor(i, 0), ct * 0.0 + 1.0, P[(i, 0)])
                        if isinstance(P[(i, 0)], (int, float))
                        else _sph_prefactor(i, 0) * P[(i, 0)])
            for m in range(1, i + 1):
                cols.append(_scaled(sqrt2 * _sph_prefactor(i, m), C[m], P[(i, m)]))
            for m in range(i, 0, -1):
                cols.append(_scaled(sqrt2 * _sph_prefactor(i, m), S[m], P[(i, m)]))

        # ---- out[(a*n+b)*k : +k, :] = cbf_col[a*n+b] * rbf_block[b]  (direct stores)
        for a in range(n):
            for b in range(n):
                col = cols[a * n + b]                      # (1, TT) array or float
                start = (a * n + b) * k
                o_ref[start:start + k, :] = (col * rbf_blocks[b]).astype(o_ref.dtype)

    return kernel


# --------------------------------------------------------------------------
# Wrapper
# --------------------------------------------------------------------------
def torsion_emb_forward(dist, angle, phi, idx_kj, *, num_spherical, num_radial,
                        cutoff=5.0, tile=512, out_dtype=jnp.float32):
    """Returns (T, num_spherical**2 * num_radial), matching torsion_emb.forward."""
    n, k = num_spherical, num_radial
    F = n * n * k
    zeros, norm = _bessel_consts(n, k)

    # single tiny constant operand: [zeros rows ; norm rows] as a (2*n*k, 1) column
    bconst = np.concatenate([zeros.reshape(n * k), norm.reshape(n * k)]).astype(np.float32)
    bconst = bconst.reshape(2 * n * k, 1)

    T = int(angle.shape[0])

    # glue: rbf is elementwise in dist, so rbf[idx_kj] == rbf(dist[idx_kj])
    dist_kj = jnp.asarray(dist, jnp.float32)[jnp.asarray(idx_kj)]

    # lane-dense layout: triplets on the lane (last) axis, padded to a tile multiple.
    tile = max(128, (int(tile) // 128) * 128)
    tile = min(tile, _cdiv(T, 128) * 128)        # don't over-pad tiny inputs
    T_pad = _cdiv(T, tile) * tile
    pad = T_pad - T

    # pad dist with `cutoff` (t > 0 -> no NaNs); padded lanes are sliced off below.
    d_row = jnp.pad(dist_kj, (0, pad), constant_values=float(cutoff)).reshape(1, T_pad)
    a_row = jnp.pad(jnp.asarray(angle, jnp.float32), (0, pad),
                    constant_values=1.0).reshape(1, T_pad)
    p_row = jnp.pad(jnp.asarray(phi, jnp.float32), (0, pad),
                    constant_values=1.0).reshape(1, T_pad)

    kernel = _make_kernel(n, k, float(cutoff))
    out_t = pl.pallas_call(
        kernel,
        out_shape=jax.ShapeDtypeStruct((F, T_pad), out_dtype),
        grid_spec=pltpu.PrefetchScalarGridSpec(
            num_scalar_prefetch=0,
            grid=(T_pad // tile,),
            in_specs=[
                pl.BlockSpec((2 * n * k, 1), lambda i: (0, 0)),  # Bessel constants
                pl.BlockSpec((1, tile), lambda i: (0, i)),       # dist[idx_kj]
                pl.BlockSpec((1, tile), lambda i: (0, i)),       # angle (theta)
                pl.BlockSpec((1, tile), lambda i: (0, i)),       # phi
            ],
            out_specs=pl.BlockSpec((F, tile), lambda i: (0, i)), # (F, tile): unmasked stores
        ),
        compiler_params=pltpu.CompilerParams(dimension_semantics=("parallel",)),
    )(jnp.asarray(bconst), d_row, a_row, p_row)

    # back to the module's (T, F) layout; drop the padded tail.
    return out_t[:, :T].T


# --------------------------------------------------------------------------
# Pure numpy reference (same math, float64) for validation
# --------------------------------------------------------------------------
def torsion_emb_reference(dist, angle, phi, idx_kj, num_spherical, num_radial, cutoff=5.0):
    n, k = num_spherical, num_radial
    zeros, norm = _bessel_consts(n, k)
    zeros = zeros.astype(np.float64)
    norm = norm.astype(np.float64)
    dist = np.asarray(dist, np.float64)
    angle = np.asarray(angle, np.float64)
    phi = np.asarray(phi, np.float64)
    idx_kj = np.asarray(idx_kj)
    E, T = dist.shape[0], angle.shape[0]

    x = dist / cutoff
    rbf = np.zeros((E, n * k), dtype=np.float64)
    for i in range(n):
        for j in range(k):
            rbf[:, i * k + j] = norm[i, j] * _sph_jn_np(i, zeros[i, j] * x)

    ct, st = np.cos(angle), np.sin(angle)
    P = {(0, 0): np.ones(T)}
    if n > 1:
        P[(1, 0)] = ct
    for l in range(2, n):
        P[(l, 0)] = ((2 * l - 1) * ct * P[(l - 1, 0)] - (l - 1) * P[(l - 2, 0)]) / l
    for m in range(1, n):
        P[(m, m)] = (1 - 2 * m) * P[(m - 1, m - 1)] * np.ones(T)
        if m + 1 < n:
            P[(m + 1, m)] = (2 * m + 1) * ct * P[(m, m)]
        for l in range(m + 2, n):
            P[(l, m)] = ((2 * l - 1) * ct * P[(l - 1, m)] - (m + l - 1) * P[(l - 2, m)]) / (l - m)
    sx, sy = st * np.cos(phi), st * np.sin(phi)
    C, S = [np.ones(T)], [np.zeros(T)]
    for m in range(1, n):
        c_new = sx * C[m - 1] - sy * S[m - 1]
        s_new = sx * S[m - 1] + sy * C[m - 1]
        C.append(c_new)
        S.append(s_new)

    cols = [np.full(T, _sph_prefactor(0, 0))]
    sqrt2 = math.sqrt(2.0)
    for i in range(1, n):
        cols.append(_sph_prefactor(i, 0) * P[(i, 0)])
        for m in range(1, i + 1):
            cols.append(sqrt2 * _sph_prefactor(i, m) * C[m] * P[(i, m)])
        for m in range(i, 0, -1):
            cols.append(sqrt2 * _sph_prefactor(i, m) * S[m] * P[(i, m)])
    cbf = np.stack(cols, axis=1)                       # (T, n*n)

    rbf_g = rbf[idx_kj]                                # (T, n*k)
    out = (rbf_g.reshape(T, 1, n, k) * cbf.reshape(T, n, n, 1)).reshape(T, n * n * k)
    return out


# --------------------------------------------------------------------------
if __name__ == "__main__":
    num_spherical, num_radial, cutoff = 3, 6, 5.0
    E, T = 128, 1000            # T is deliberately NOT a tile multiple (exercises padding)

    key = jax.random.PRNGKey(0)
    kd, ka, kp, ki = jax.random.split(key, 4)
    dist = jax.random.uniform(kd, (E,), jnp.float32, minval=0.5, maxval=cutoff)
    angle = jax.random.uniform(ka, (T,), jnp.float32, minval=0.05, maxval=math.pi - 0.05)
    phi = jax.random.uniform(kp, (T,), jnp.float32, minval=-math.pi, maxval=math.pi)
    idx_kj = jax.random.randint(ki, (T,), 0, E)

    out = torsion_emb_forward(dist, angle, phi, idx_kj,
                              num_spherical=num_spherical,
                              num_radial=num_radial,
                              cutoff=cutoff, tile=512)
    out = jax.block_until_ready(out)
    assert out.shape == (T, num_spherical ** 2 * num_radial)

    ref = torsion_emb_reference(np.array(dist), np.array(angle), np.array(phi),
                                np.array(idx_kj), num_spherical, num_radial, cutoff)
    np.testing.assert_allclose(np.array(out), ref, rtol=2e-3, atol=2e-3)
    print("KERNEL_OK")
</pallas_src>

<mosaic_0001>
module attributes {stable_mosaic.version = 11 : i64} {
  func.func @kernel(%arg0: i32, %arg1: memref<36x1xf32, #tpu.memory_space<vmem>>, %arg2: memref<1x512xf32, #tpu.memory_space<vmem>>, %arg3: memref<1x512xf32, #tpu.memory_space<vmem>>, %arg4: memref<1x512xf32, #tpu.memory_space<vmem>>, %arg5: memref<54x512xf32, #tpu.memory_space<vmem>>) attributes {dimension_semantics = [#tpu.dimension_semantics<parallel>], iteration_bounds = array<i64: 2>, scalar_prefetch = 0 : i64, scratch_operands = 0 : i64, tpu.core_type = #tpu.core_type<tc>, window_params = [{pipeline_mode = #tpu.pipeline_mode<synchronous>, transform_indices = @transform_0, window_bounds = array<i64: 36, 1>}, {transform_indices = @transform_1, window_bounds = array<i64: 1, 512>}, {transform_indices = @transform_2, window_bounds = array<i64: 1, 512>}, {transform_indices = @transform_3, window_bounds = array<i64: 1, 512>}, {transform_indices = @transform_4, window_bounds = array<i64: 54, 512>}]} {
    %c0 = arith.constant 0 : index
    %c0_0 = arith.constant 0 : index
    %0 = vector.load %arg2[%c0, %c0_0] : memref<1x512xf32, #tpu.memory_space<vmem>>, vector<1x512xf32>
    %cst = arith.constant 2.000000e-01 : f32
    %1 = vector.broadcast %cst : f32 to vector<1x512xf32>
    %2 = arith.mulf %0, %1 : vector<1x512xf32>
    %c0_1 = arith.constant 0 : index
    %c0_2 = arith.constant 0 : index
    %3 = vector.load %arg3[%c0_1, %c0_2] : memref<1x512xf32, #tpu.memory_space<vmem>>, vector<1x512xf32>
    %c0_3 = arith.constant 0 : index
    %c0_4 = arith.constant 0 : index
    %4 = vector.load %arg4[%c0_3, %c0_4] : memref<1x512xf32, #tpu.memory_space<vmem>>, vector<1x512xf32>
    %c0_5 = arith.constant 0 : index
    %c0_6 = arith.constant 0 : index
    %5 = vector.load %arg1[%c0_5, %c0_6] : memref<36x1xf32, #tpu.memory_space<vmem>>, vector<6x1xf32>
    %c18 = arith.constant 18 : index
    %c0_7 = arith.constant 0 : index
    %6 = vector.load %arg1[%c18, %c0_7] : memref<36x1xf32, #tpu.memory_space<vmem>>, vector<6x1xf32>
    %7 = vector.broadcast %5 : vector<6x1xf32> to vector<6x512xf32>
    %8 = vector.broadcast %2 : vector<1x512xf32> to vector<6x512xf32>
    %9 = arith.mulf %7, %8 : vector<6x512xf32>
    %10 = math.sin %9 : vector<6x512xf32>
    %cst_8 = arith.constant 1.000000e+00 : f32
    %11 = vector.broadcast %cst_8 : f32 to vector<6x512xf32>
    %12 = arith.divf %11, %9 : vector<6x512xf32>
    %13 = arith.mulf %10, %12 : vector<6x512xf32>
    %14 = vector.broadcast %6 : vector<6x1xf32> to vector<6x512xf32>
    %15 = arith.mulf %13, %14 : vector<6x512xf32>
    %c6 = arith.constant 6 : index
    %c0_9 = arith.constant 0 : index
    %16 = vector.load %arg1[%c6, %c0_9] : memref<36x1xf32, #tpu.memory_space<vmem>>, vector<6x1xf32>
    %c24 = arith.constant 24 : index
    %c0_10 = arith.constant 0 : index
    %17 = vector.load %arg1[%c24, %c0_10] : memref<36x1xf32, #tpu.memory_space<vmem>>, vector<6x1xf32>
    %18 = vector.broadcast %16 : vector<6x1xf32> to vector<6x512xf32>
    %19 = vector.broadcast %2 : vector<1x512xf32> to vector<6x512xf32>
    %20 = arith.mulf %18, %19 : vector<6x512xf32>
    %21 = math.sin %20 : vector<6x512xf32>
    %cst_11 = arith.constant 1.000000e+00 : f32
    %22 = vector.broadcast %cst_11 : f32 to vector<6x512xf32>
    %23 = arith.divf %22, %20 : vector<6x512xf32>
    %24 = arith.mulf %21, %23 : vector<6x512xf32>
    %25 = math.cos %20 : vector<6x512xf32>
    %26 = arith.subf %24, %25 : vector<6x512xf32>
    %27 = arith.mulf %26, %23 : vector<6x512xf32>
    %28 = vector.broadcast %17 : vector<6x1xf32> to vector<6x512xf32>
    %29 = arith.mulf %27, %28 : vector<6x512xf32>
    %c12 = arith.constant 12 : index
    %c0_12 = arith.constant 0 : index
    %30 = vector.load %arg1[%c12, %c0_12] : memref<36x1xf32, #tpu.memory_space<vmem>>, vector<6x1xf32>
    %c30 = arith.constant 30 : index
    %c0_13 = arith.constant 0 : index
    %31 = vector.load %arg1[%c30, %c0_13] : memref<36x1xf32, #tpu.memory_space<vmem>>, vector<6x1xf32>
    %32 = vector.broadcast %30 : vector<6x1xf32> to vector<6x512xf32>
    %33 = vector.broadcast %2 : vector<1x512xf32> to vector<6x512xf32>
    %34 = arith.mulf %32, %33 : vector<6x512xf32>
    %35 = math.sin %34 : vector<6x512xf32>
    %cst_14 = arith.constant 1.000000e+00 : f32
    %36 = vector.broadcast %cst_14 : f32 to vector<6x512xf32>
    %37 = arith.divf %36, %34 : vector<6x512xf32>
    %38 = arith.mulf %35, %37 : vector<6x512xf32>
    %39 = math.cos %34 : vector<6x512xf32>
    %40 = arith.subf %38, %39 : vector<6x512xf32>
    %41 = arith.mulf %40, %37 : vector<6x512xf32>
    %cst_15 = arith.constant 3.000000e+00 : f32
    %42 = vector.broadcast %cst_15 : f32 to vector<6x512xf32>
    %43 = arith.mulf %42, %37 : vector<6x512xf32>
    %44 = arith.mulf %43, %41 : vector<6x512xf32>
    %45 = arith.subf %44, %38 : vector<6x512xf32>
    %46 = vector.broadcast %31 : vector<6x1xf32> to vector<6x512xf32>
    %47 = arith.mulf %45, %46 : vector<6x512xf32>
    %48 = math.cos %3 : vector<1x512xf32>
    %49 = math.sin %3 : vector<1x512xf32>
    %cst_16 = arith.constant 3.000000e+00 : f32
    %50 = vector.broadcast %cst_16 : f32 to vector<1x512xf32>
    %51 = arith.mulf %50, %48 : vector<1x512xf32>
    %52 = arith.mulf %51, %48 : vector<1x512xf32>
    %cst_17 = arith.constant 1.000000e+00 : f32
    %53 = vector.broadcast %cst_17 : f32 to vector<1x512xf32>
    %54 = arith.subf %52, %53 : vector<1x512xf32>
    %cst_18 = arith.constant 5.000000e-01 : f32
    %55 = vector.broadcast %cst_18 : f32 to vector<1x512xf32>
    %56 = arith.mulf %54, %55 : vector<1x512xf32>
    %cst_19 = arith.constant 3.000000e+00 : f32
    %57 = vector.broadcast %cst_19 : f32 to vector<1x512xf32>
    %58 = arith.mulf %57, %48 : vector<1x512xf32>
    %cst_20 = arith.constant -1.000000e+00 : f32
    %59 = vector.broadcast %cst_20 : f32 to vector<1x512xf32>
    %60 = arith.mulf %58, %59 : vector<1x512xf32>
    %61 = math.cos %4 : vector<1x512xf32>
    %62 = arith.mulf %49, %61 : vector<1x512xf32>
    %63 = math.sin %4 : vector<1x512xf32>
    %64 = arith.mulf %49, %63 : vector<1x512xf32>
    %65 = arith.mulf %62, %62 : vector<1x512xf32>
    %66 = arith.mulf %64, %64 : vector<1x512xf32>
    %67 = arith.subf %65, %66 : vector<1x512xf32>
    %68 = arith.mulf %62, %64 : vector<1x512xf32>
    %69 = arith.mulf %64, %62 : vector<1x512xf32>
    %70 = arith.addf %68, %69 : vector<1x512xf32>
    %cst_21 = arith.constant 0.488602519 : f32
    %71 = vector.broadcast %cst_21 : f32 to vector<1x512xf32>
    %72 = arith.mulf %71, %48 : vector<1x512xf32>
    %cst_22 = arith.constant -0.488602519 : f32
    %73 = vector.broadcast %cst_22 : f32 to vector<1x512xf32>
    %74 = arith.mulf %73, %62 : vector<1x512xf32>
    %cst_23 = arith.constant -0.488602519 : f32
    %75 = vector.broadcast %cst_23 : f32 to vector<1x512xf32>
    %76 = arith.mulf %75, %64 : vector<1x512xf32>
    %cst_24 = arith.constant 0.63078314 : f32
    %77 = vector.broadcast %cst_24 : f32 to vector<1x512xf32>
    %78 = arith.mulf %77, %56 : vector<1x512xf32>
    %cst_25 = arith.constant 0.3641828 : f32
    %79 = vector.broadcast %cst_25 : f32 to vector<1x512xf32>
    %80 = arith.mulf %79, %62 : vector<1x512xf32>
    %81 = arith.mulf %80, %60 : vector<1x512xf32>
    %cst_26 = arith.constant 0.546274245 : f32
    %82 = vector.broadcast %cst_26 : f32 to vector<1x512xf32>
    %83 = arith.mulf %82, %67 : vector<1x512xf32>
    %cst_27 = arith.constant 0.546274245 : f32
    %84 = vector.broadcast %cst_27 : f32 to vector<1x512xf32>
    %85 = arith.mulf %84, %70 : vector<1x512xf32>
    %cst_28 = arith.constant 0.3641828 : f32
    %86 = vector.broadcast %cst_28 : f32 to vector<1x512xf32>
    %87 = arith.mulf %86, %64 : vector<1x512xf32>
    %88 = arith.mulf %87, %60 : vector<1x512xf32>
    %cst_29 = arith.constant 0.282094806 : f32
    %89 = vector.broadcast %cst_29 : f32 to vector<6x512xf32>
    %90 = arith.mulf %89, %15 : vector<6x512xf32>
    %c0_30 = arith.constant 0 : index
    %c0_31 = arith.constant 0 : index
    %91 = vector.load %arg5[%c0_30, %c0_31] : memref<54x512xf32, #tpu.memory_space<vmem>>, vector<6x512xf32>
    tpu.vector_store %arg5[%c0_30, %c0_31], %90 {strides = array<i32>} : memref<54x512xf32, #tpu.memory_space<vmem>>, vector<6x512xf32>,
    %92 = vector.broadcast %72 : vector<1x512xf32> to vector<6x512xf32>
    %93 = arith.mulf %92, %29 : vector<6x512xf32>
    %c6_32 = arith.constant 6 : index
    %c0_33 = arith.constant 0 : index
    %94 = vector.load %arg5[%c6_32, %c0_33] : memref<54x512xf32, #tpu.memory_space<vmem>>, vector<6x512xf32>
    tpu.vector_store %arg5[%c6_32, %c0_33], %93 {strides = array<i32>} : memref<54x512xf32, #tpu.memory_space<vmem>>, vector<6x512xf32>,
    %95 = vector.broadcast %74 : vector<1x512xf32> to vector<6x512xf32>
    %96 = arith.mulf %95, %47 : vector<6x512xf32>
    %c12_34 = arith.constant 12 : index
    %c0_35 = arith.constant 0 : index
    %97 = vector.load %arg5[%c12_34, %c0_35] : memref<54x512xf32, #tpu.memory_space<vmem>>, vector<6x512xf32>
    tpu.vector_store %arg5[%c12_34, %c0_35], %96 {strides = array<i32>} : memref<54x512xf32, #tpu.memory_space<vmem>>, vector<6x512xf32>,
    %98 = vector.broadcast %76 : vector<1x512xf32> to vector<6x512xf32>
    %99 = arith.mulf %98, %15 : vector<6x512xf32>
    %c18_36 = arith.constant 18 : index
    %c0_37 = arith.constant 0 : index
    %100 = vector.load %arg5[%c18_36, %c0_37] : memref<54x512xf32, #tpu.memory_space<vmem>>, vector<6x512xf32>
    tpu.vector_store %arg5[%c18_36, %c0_37], %99 {strides = array<i32>} : memref<54x512xf32, #tpu.memory_space<vmem>>, vector<6x512xf32>,
    %101 = vector.broadcast %78 : vector<1x512xf32> to vector<6x512xf32>
    %102 = arith.mulf %101, %29 : vector<6x512xf32>
    %c24_38 = arith.constant 24 : index
    %c0_39 = arith.constant 0 : index
    %103 = vector.load %arg5[%c24_38, %c0_39] : memref<54x512xf32, #tpu.memory_space<vmem>>, vector<6x512xf32>
    tpu.vector_store %arg5[%c24_38, %c0_39], %102 {strides = array<i32>} : memref<54x512xf32, #tpu.memory_space<vmem>>, vector<6x512xf32>,
    %104 = vector.broadcast %81 : vector<1x512xf32> to vector<6x512xf32>
    %105 = arith.mulf %104, %47 : vector<6x512xf32>
    %c30_40 = arith.constant 30 : index
    %c0_41 = arith.constant 0 : index
    %106 = vector.load %arg5[%c30_40, %c0_41] : memref<54x512xf32, #tpu.memory_space<vmem>>, vector<6x512xf32>
    tpu.vector_store %arg5[%c30_40, %c0_41], %105 {strides = array<i32>} : memref<54x512xf32, #tpu.memory_space<vmem>>, vector<6x512xf32>,
    %107 = vector.broadcast %83 : vector<1x512xf32> to vector<6x512xf32>
    %108 = arith.mulf %107, %15 : vector<6x512xf32>
    %c36 = arith.constant 36 : index
    %c0_42 = arith.constant 0 : index
    %109 = vector.load %arg5[%c36, %c0_42] : memref<54x512xf32, #tpu.memory_space<vmem>>, vector<6x512xf32>
    tpu.vector_store %arg5[%c36, %c0_42], %108 {strides = array<i32>} : memref<54x512xf32, #tpu.memory_space<vmem>>, vector<6x512xf32>,
    %110 = vector.broadcast %85 : vector<1x512xf32> to vector<6x512xf32>
    %111 = arith.mulf %110, %29 : vector<6x512xf32>
    %c42 = arith.constant 42 : index
    %c0_43 = arith.constant 0 : index
    %112 = vector.load %arg5[%c42, %c0_43] : memref<54x512xf32, #tpu.memory_space<vmem>>, vector<6x512xf32>
    tpu.vector_store %arg5[%c42, %c0_43], %111 {strides = array<i32>} : memref<54x512xf32, #tpu.memory_space<vmem>>, vector<6x512xf32>,
    %113 = vector.broadcast %88 : vector<1x512xf32> to vector<6x512xf32>
    %114 = arith.mulf %113, %47 : vector<6x512xf32>
    %c48 = arith.constant 48 : index
    %c0_44 = arith.constant 0 : index
    %115 = vector.load %arg5[%c48, %c0_44] : memref<54x512xf32, #tpu.memory_space<vmem>>, vector<6x512xf32>
    tpu.vector_store %arg5[%c48, %c0_44], %114 {strides = array<i32>} : memref<54x512xf32, #tpu.memory_space<vmem>>, vector<6x512xf32>,
    return
  }
  func.func @transform_0(%arg0: i32) -> (i32, i32) {
    %c0_i32 = arith.constant 0 : i32
    %c0_i32_0 = arith.constant 0 : i32
    %c0_i32_1 = arith.constant 0 : i32
    return %c0_i32, %c0_i32_0 : i32, i32
  }
  func.func @transform_1(%arg0: i32) -> (i32, i32) {
    %c0_i32 = arith.constant 0 : i32
    %c0_i32_0 = arith.constant 0 : i32
    return %c0_i32, %arg0 : i32, i32
  }
  func.func @transform_2(%arg0: i32) -> (i32, i32) {
    %c0_i32 = arith.constant 0 : i32
    %c0_i32_0 = arith.constant 0 : i32
    return %c0_i32, %arg0 : i32, i32
  }
  func.func @transform_3(%arg0: i32) -> (i32, i32) {
    %c0_i32 = arith.constant 0 : i32
    %c0_i32_0 = arith.constant 0 : i32
    return %c0_i32, %arg0 : i32, i32
  }
  func.func @transform_4(%arg0: i32) -> (i32, i32) {
    %c0_i32 = arith.constant 0 : i32
    %c0_i32_0 = arith.constant 0 : i32
    return %c0_i32, %arg0 : i32, i32
  }
}

</mosaic_0001>

<bundles_post_ra>
// kernel: tpu_custom_call.1
= control target key start
LH: loop header
LB: loop body
LE: loop exit
PB: predicated region body
PF: predicated region fallthrough
CT: control target
= control target key end

     0   :  { %9 = vsyncpa [#allocation3], 0  ;;  %s5927_s0 = inlined_call_operand.vmem [shape: f32[36,1], index: 0, kind: input, shape index: {}]   ;;  %s5928_s1 = inlined_call_operand.vmem [shape: f32[1,1024], index: 1, kind: input, shape index: {}]   ;;  %s5929_s2 = inlined_call_operand.vmem [shape: f32[1,1024], index: 2, kind: input, shape index: {}]   ;;  %s5930_s3 = inlined_call_operand.vmem [shape: f32[1,1024], index: 3, kind: input, shape index: {}]   ;;  %s5931_s4 = inlined_call_operand.hbm [shape: f32[54,1024], index: 4, kind: output, shape index: {}]  }
   0x1   :  { %11 = vsyncpa [#allocation3 + $0x1], 0  ;;  %s3705_s15 = smov 0   ;;  %s3707_s16 = smov 0  }
   0x2   :  { %s3709_s17 = smov 0   ;;  %s3711_s18 = smov 0  }
   0x3 LB: > { %s3726_s19 = sadd.s32 4294967295, %s3667_s18   ;;  %s3310_s20 = sadd.s32 4294967294, %s3667_s18   ;;  %s3667_s18 = sphi %s3711_s18, %s6073_s18   ;;  %s3663_s17 = sphi %s3709_s17, %s6072_s17   ;;  %s3659_s16 = sphi %s3707_s16, %s6071_s16   ;;  %s3655_s15 = sphi %s3705_s15, %s6070_s15  }
   0x4   : > { %s3730_s21 = sadd.s32 1, %s3667_s18   ;;  %s123_s22 = sadd.s32 1, %s3663_s17 }
   0x5   : > { %s120_s23 = ssub.s32 %s3667_s18, %s3730_s21  ;;  %p133_p0 = scmp.ne.s32.totalorder %s3663_s17, %s3659_s16 }
   0x6   : > { %p121_p1 = scmp.eq.s32.totalorder %s120_s23, 0  ;;  %p134_p2 = scmp.eq.s32.totalorder %s3726_s19, 1 }
   0x7   : > { %p139_p3 = scmp.ne.s32.totalorder %s3659_s16, %s3655_s15  ;;  %p140_p4 = scmp.eq.s32.totalorder %s3310_s20, 1 }
   0x8   : > { %s3741_s24 = scalar_select %p121_p1, %s3663_s17, %s123_s22  }
   0x9   : > { %p3743_p5 = por %p134_p2, %p133_p0  ;;  %p3747_p6 = por %p140_p4, %p139_p3 }
   0xa   : > { %p3313_p7 = scmp.ge.s32.totalorder %s3667_s18, 1  ;;  %p185_p8 = scmp.lt.s32.totalorder %s3667_s18, 3 }
   0xc   : > { %p186_p9 = pnand %p3313_p7, %p185_p8 }
   0xe   : > { %189 = sbr.rel (%p186_p9) target bundleno = 592 (0x250), region = 36 }
  0x13   : > { %v1575_v0 = vld [vmem:[%s5927_s0 + $0xc] sm:$0x3f]  ;;  %v238_v1 = vld [vmem:[%s5927_s0] sm:$0x3f]  ;;  %v3669_v2 = vmov 0   ;;  %s3314_s13 = sshll.u32 %s3726_s19, 2  ;;  %v246_v7 = vlaneseq }
  0x14   : > { %3526 = vset.pattern.permute.xlu1 %v3669_v2  ;;  %3525 = vset.pattern.permute.xlu0 %v3669_v2  ;;  %v707_v3 = vld [vmem:[%s5927_s0 + $0x6] sm:$0x3f]  ;;  %v239_v4 = vld [vmem:[%s5927_s0 + $0x12] sm:$0x3f]  ;;  %v708_v5 = vld [vmem:[%s5927_s0 + $0x18] sm:$0x3f] }
  0x15   : > { %1579 = vperm.xlu0 %3525, %v1575_v0   ;;  %242 = vperm.xlu1 %3526, %v238_v1   ;;  %v1576_v6 = vld [vmem:[%s5927_s0 + $0x1e] sm:$0x3f]  ;;  %p219_p10 = scmp.lt.s32.totalorder %s3314_s13, 7  ;;  %v247_v8 = vshrl.u32 %v246_v7, 7  ;;  %v5951_v37 = vmov 920167782  }
  0x16   : > { %v5943_v39 = vmov 1326507024   ;;  %v5936_v45 = vmov 2102212464   ;;  %v5941_v49 = vmov 2475754826  }
  0x17   : > { %s6075_s13 = smov (!%p219_p10, %s3314_s13), 7  ;;  %v3778_v11 = vsub.s32 0, %v247_v8  ;;  %v3783_v14 = vsub.s32 1, %v247_v8  ;;  %v3796_v22 = vsub.s32 2, %v247_v8  ;;  %v3805_v32 = vsub.s32 3, %v247_v8  ;;  %s215_s29 = sand.u32 1, %s3659_s16  }
  0x18   : > { %s221_s22 = scalar_lea.vmem %s5928_s1, %s6075_s13  ;;  %v5939_v51 = vmov 2131351028   ;;  %v5956_v55 = vmov 683565275   ;;  %s226_s28 = scalar_lea.vmem %s5929_s2, %s6075_s13 }
  0x19   : > { %711 = vperm.xlu0 %3525, %v707_v3   ;;  %700 = vperm.xlu1 %3526, %v239_v4   ;;  %v234_v9 = vld [vmem:[%s221_s22] sm:$0xf]  ;;  %5984 = vst [vmem:[#allocation5_spill] sm:$0xff] %v3778_v11  ;;  %5985 = vst [vmem:[#allocation6_spill] sm:$0xff] %v3783_v14  ;;  %s5284_s30 = smul.u32 224, %s215_s29  ;;  %s231_s8 = scalar_lea.vmem %s5930_s3, %s6075_s13 }
  0x1a   : > { %v235_v10 = vmul.f32 0.2, %v234_v9  ;;  %5986 = vst [vmem:[#allocation7_spill] sm:$0xff] %v3796_v22  ;;  %5988 = vst [vmem:[#allocation9_spill] sm:$0xff] %v3805_v32  ;;  %s3418_s9 = sshll.u32 %s3726_s19, 9  ;;  %s5887_s13 = scalar_lea.sflag [#allocation3], %s215_s29 }
  0x1b   : > { %s5313_s5 = scalar_lea.vmem [#allocation2], %s5284_s30  ;;  %s5869_s12 = scalar_lea.hbm %s5931_s4, %s3418_s9 }
  0x1c   : > { %v3781_v12 = vrot.slane %v235_v10, %v3778_v11  ;;  %v3790_v17 = vrot.slane %v235_v10, %v3783_v14  ;;  %v3799_v25 = vrot.slane %v235_v10, %v3796_v22  ;;  %v3810_v35 = vrot.slane %v235_v10, %v3805_v32  ;;  %s3233_s10 = sshll.u32 %s5313_s5, 4  ;;  %s3676_s20 = smov [#allocation2]   ;;  %s5873_s10 = int_to_ptr.vmem [resolvable:$true] %s3233_s10 }
  0x1d   : > { %1568 = vperm.xlu0 %3525, %v708_v5   ;;  %2448 = vperm.xlu1 %3526, %v1576_v6   ;;  %s3607_s14 = scalar_lea.vmem %s5873_s10, 3584  ;;  %s3611_s22 = sshll.u32 %s3676_s20, 4  ;;  %s3612_s22 = int_to_ptr.vmem [resolvable:$false] %s3611_s22 }
  0x1e   : > { %5987 = vst [vmem:[#allocation8_spill] sm:$0xff] %v3799_v25  ;;  %5989 = vst [vmem:[#allocation10_spill] sm:$0xff] %v3810_v35  ;;  %p3608_p11 = scmp.ne.s32.totalorder %s5873_s10, %s3607_s14  ;;  %s3613_s23 = scalar_lea.vmem %s3612_s22, 7168 }
  0x1f   : > { %p3614_p0 = scmp.lt.s32.totalorder %s5873_s10, %s3612_s22  ;;  %p3615_p1 = scmp.lt.s32.totalorder %s3613_s23, %s3607_s14 }
  0x20   : > { %p3609_p12 = pnand %p3608_p11, %p3743_p5 }
  0x21   : > { %p3616_p2 = por %p3615_p1, %p3614_p0 }
  0x22   : > { %p3610_p13 = pneg %p3609_p12 }
  0x24   : > { %p3617_p3 = pnand %p3616_p2, %p3610_p13 }
  0x90   : > { %v243_v13 = vpop.permute.xlu1 %242 }
  0x91   : > { %v3786_v15 = vmul.f32 %v3781_v12, %v243_v13  ;;  %v3793_v19 = vmul.f32 %v3790_v17, %v243_v13  ;;  %v3802_v27 = vmul.f32 %v3799_v25, %v243_v13  ;;  %v3819_v44 = vmul.f32 %v3810_v35, %v243_v13 }
  0x93   : > { %v273_v16 = vand.u32 2139095040, %v3786_v15  ;;  %v377_v21 = vand.u32 2139095040, %v3793_v19  ;;  %v481_v31 = vand.u32 2139095040, %v3802_v27  ;;  %v5935_v41 = vand.u32 2147483647, %v3786_v15 }
  0x94   : > { %v5934_v60 = vand.u32 2147483647, %v3793_v19  ;;  %v585_v63 = vand.u32 2139095040, %v3819_v44 }
  0x95   : > { %v274_v18 = vshrl.u32 %v273_v16, 23  ;;  %v378_v24 = vshrl.u32 %v377_v21, 23  ;;  %v482_v34 = vshrl.u32 %v481_v31, 23  ;;  %v277_v59 = vand.u32 8388607, %v5935_v41 }
  0x96   : > { %v381_v6 = vand.u32 8388607, %v5934_v60  ;;  %v586_v9 = vshrl.u32 %v585_v63, 23 }
  0x97   : > { %v3317_v20 = vadd.s32 4294967169, %v274_v18  ;;  %v3321_v26 = vadd.s32 4294967169, %v378_v24  ;;  %v3325_v43 = vadd.s32 4294967169, %v482_v34  ;;  %v278_v5 = vor.u32 8388608, %v277_v59 }
  0x99   : > { %v280_v23 = vadd.s32 1, %v3317_v20  ;;  %v384_v30 = vadd.s32 1, %v3321_v26  ;;  %v488_v61 = vadd.s32 1, %v3325_v43 }
  0x9b   : > { %vm281_vm0 = vcmp.gt.s32.totalorder %v280_v23, 0  ;;  %vm385_vm1 = vcmp.gt.s32.totalorder %v384_v30, 0  ;;  %vm489_vm5 = vcmp.gt.s32.totalorder %v488_v61, 0 }
  0x9c   : > { %v282_v28 = vsel %vm281_vm0, %v280_v23, 0  ;;  %v386_v36 = vsel %vm385_vm1, %v384_v30, 0  ;;  %v490_v24 = vsel %vm489_vm5, %v488_v61, 0  ;;  %v3329_v61 = vadd.s32 4294967169, %v586_v9 }
  0x9d   : > { %v284_v29 = vand.u32 31, %v282_v28  ;;  %v3816_v42 = vshrl.u32 %v282_v28, 5  ;;  %v388_v48 = vand.u32 31, %v386_v36  ;;  %v3849_v8 = vshrl.u32 %v386_v36, 5 }
  0x9f   : > { %v3807_v33 = vsub.s32 32, %v284_v29  ;;  %v299_v38 = vshll.u32 %v5951_v37, %v284_v29  ;;  %v296_v46 = vshll.u32 %v5936_v45, %v284_v29  ;;  %v290_v50 = vshll.u32 %v5941_v49, %v284_v29 }
  0xa0   : > { %v293_v53 = vshll.u32 %v5939_v51, %v284_v29  ;;  %v287_v56 = vshll.u32 %v5956_v55, %v284_v29  ;;  %vm305_vm2 = vcmp.lt.s32.totalorder %v3816_v42, 4  ;;  %v3838_v2 = vsub.s32 32, %v388_v48 }
  0xa1   : > { %v300_v40 = vshrl.u32 %v5943_v39, %v3807_v33  ;;  %v297_v47 = vshrl.u32 %v5951_v37, %v3807_v33  ;;  %v291_v52 = vshrl.u32 %v5939_v51, %v3807_v33  ;;  %v294_v54 = vshrl.u32 %v5936_v45, %v3807_v33 }
  0xa2   : > { %v288_v57 = vshrl.u32 %v5941_v49, %v3807_v33  ;;  %vm302_vm3 = vcmp.lt.s32.totalorder %v3816_v42, 1  ;;  %vm304_vm4 = vcmp.lt.s32.totalorder %v3816_v42, 3  ;;  %vm303_vm6 = vcmp.lt.s32.totalorder %v3816_v42, 2 }
  0xa3   : > { %v301_v58 = vor.u32 %v300_v40, %v299_v38  ;;  %v298_v62 = vor.u32 %v297_v47, %v296_v46  ;;  %v292_v0 = vor.u32 %v291_v52, %v290_v50  ;;  %v295_v1 = vor.u32 %v294_v54, %v293_v53 }
  0xa4   : > { %v289_v3 = vor.u32 %v288_v57, %v287_v56  ;;  %v400_v16 = vshll.u32 %v5936_v45, %v388_v48  ;;  %v401_v18 = vshrl.u32 %v5951_v37, %v3838_v2  ;;  %v391_v21 = vshll.u32 %v5956_v55, %v388_v48 }
  0xa5   : > { %v315_v4 = vsel %vm305_vm2, %v301_v58, 1326507024  ;;  %v311_v7 = vsel %vm305_vm2, %v298_v62, 920167782  ;;  %v314_v10 = vsel %vm302_vm3, %v292_v0, %v295_v1  ;;  %v394_v23 = vshll.u32 %v5941_v49, %v388_v48 }
  0xa6   : > { %v316_v13 = vsel %vm304_vm4, %v298_v62, %v315_v4  ;;  %v310_v20 = vsel %vm302_vm3, %v289_v3, %v292_v0  ;;  %v312_v26 = vsel %vm304_vm4, %v295_v1, %v311_v7  ;;  %v392_v28 = vshrl.u32 %v5941_v49, %v3838_v2 }
  0xa7   : > { %v403_v29 = vshll.u32 %v5951_v37, %v388_v48  ;;  %v404_v30 = vshrl.u32 %v5943_v39, %v3838_v2  ;;  %v317_v31 = vsel %vm303_vm6, %v314_v10, %v316_v13  ;;  %v395_v34 = vshrl.u32 %v5939_v51, %v3838_v2 }
  0xa8   : > { %v397_v36 = vshll.u32 %v5939_v51, %v388_v48  ;;  %v398_v38 = vshrl.u32 %v5936_v45, %v3838_v2  ;;  %v3876_v40 = vshll.u32 %v278_v5, 8  ;;  %v402_v43 = vor.u32 %v401_v18, %v400_v16 }
  0xa9   : > { %v492_v46 = vand.u32 31, %v490_v24  ;;  %v286_v47 = vshrl.u32 %v5956_v55, %v3807_v33  ;;  %v382_v50 = vor.u32 8388608, %v381_v6  ;;  %vm409_vm7 = vcmp.lt.s32.totalorder %v3849_v8, 4 }
  0xaa   : > { %v5933_v52 = vand.u32 2147483647, %v3802_v27  ;;  %v313_v53 = vsel %vm303_vm6, %v310_v20, %v312_v26  ;;  %v3885_v48 = vmul.u32.u64.low %v3876_v40, %v317_v31  ;;  %v3886_v54 = vmul.u32.u64.high %v3876_v40, %v317_v31, %v3885_v48 }
  0xab   : > { %v405_v56 = vor.u32 %v404_v30, %v403_v29  ;;  %v3888_v57 = vor.u32 %v392_v28, %v391_v21  ;;  %v3890_v58 = vor.u32 %v395_v34, %v394_v23  ;;  %v399_v59 = vor.u32 %v398_v38, %v397_v36 }
  0xac   : > { %vm406_vm8 = vcmp.lt.s32.totalorder %v3849_v8, 1  ;;  %vm408_vm9 = vcmp.lt.s32.totalorder %v3849_v8, 3  ;;  %v415_v33 = vsel %vm409_vm7, %v402_v43, 920167782  ;;  %v3896_v62 = vsub.s32 32, %v492_v46 }
  0xad   : > { %v3899_v63 = vmul.u32.u64.low %v3876_v40, %v313_v53  ;;  %v3900_v4 = vmul.u32.u64.high %v3876_v40, %v313_v53, %v3899_v63  ;;  %v307_v5 = vsel %vm305_vm2, %v295_v1, 2102212464  ;;  %v419_v6 = vsel %vm409_vm7, %v405_v56, 1326507024 }
  0xae   : > { %v485_v7 = vand.u32 8388607, %v5933_v52  ;;  %vm407_vm10 = vcmp.lt.s32.totalorder %v3849_v8, 2  ;;  %v414_v9 = vsel %vm406_vm8, %v3888_v57, %v3890_v58  ;;  %v416_v10 = vsel %vm408_vm9, %v399_v59, %v415_v33 }
  0xaf   : > { %v592_v13 = vadd.s32 1, %v3329_v61  ;;  %v306_v1 = vsel %vm302_vm3, %v286_v47, %v289_v3  ;;  %v3918_v16 = vshll.u32 %v382_v50, 8  ;;  %v507_v18 = vshll.u32 %v5951_v37, %v492_v46 }
  0xb0   : > { %v508_v20 = vshrl.u32 %v5943_v39, %v3896_v62  ;;  %v308_v21 = vsel %vm304_vm4, %v292_v0, %v307_v5  ;;  %v418_v23 = vsel %vm406_vm8, %v3890_v58, %v399_v59  ;;  %v420_v26 = vsel %vm408_vm9, %v402_v43, %v419_v6 }
  0xb1   : > { %v3930_v28 = vshrl.u32 %v490_v24, 5  ;;  %v417_v3 = vsel %vm407_vm10, %v414_v9, %v416_v10  ;;  %v498_v29 = vshll.u32 %v5941_v49, %v492_v46  ;;  %v504_v30 = vshll.u32 %v5936_v45, %v492_v46 }
  0xb2   : > { %v505_v31 = vshrl.u32 %v5951_v37, %v3896_v62  ;;  %v499_v0 = vshrl.u32 %v5939_v51, %v3896_v62  ;;  %v501_v34 = vshll.u32 %v5939_v51, %v492_v46  ;;  %v502_v36 = vshrl.u32 %v5936_v45, %v3896_v62 }
  0xb3   : > { %vm593_vm11 = vcmp.gt.s32.totalorder %v592_v13, 0  ;;  %v309_v24 = vsel %vm303_vm6, %v306_v1, %v308_v21  ;;  %vm327_vm12 = vc.u32 %v3886_v54, %v3899_v63  ;;  %v421_v38 = vsel %vm407_vm10, %v418_v23, %v420_v26 }
  0xb4   : > { %v509_v43 = vor.u32 %v508_v20, %v507_v18  ;;  %v328_v47 = vadd.s32 1, %v3900_v4  ;;  %v495_v50 = vshll.u32 %v5956_v55, %v492_v46  ;;  %v496_v53 = vshrl.u32 %v5941_v49, %v3896_v62 }
  0xb5   : > { %vm513_vm13 = vcmp.lt.s32.totalorder %v3930_v28, 4  ;;  %v3955_v48 = vmul.u32.u64.low %v3918_v16, %v417_v3  ;;  %v3956_v42 = vmul.u32.u64.high %v3918_v16, %v417_v3, %v3955_v48  ;;  %v506_v56 = vor.u32 %v505_v31, %v504_v30 }
  0xb6   : > { %v594_v61 = vsel %vm593_vm11, %v592_v13, 0  ;;  %v3960_v33 = vmul.u32.u64.low %v3918_v16, %v421_v38  ;;  %v3961_v5 = vmul.u32.u64.high %v3918_v16, %v421_v38, %v3960_v33  ;;  %v3963_v6 = vor.u32 %v499_v0, %v498_v29 }
  0xb7   : > { %v503_v9 = vor.u32 %v502_v36, %v501_v34  ;;  %v390_v46 = vshrl.u32 %v5956_v55, %v3838_v2  ;;  %vm510_vm14 = vcmp.lt.s32.totalorder %v3930_v28, 1  ;;  %vm512_vm15 = vcmp.lt.s32.totalorder %v3930_v28, 3 }
  0xb8   : > { %v523_v10 = vsel %vm513_vm13, %v509_v43, 1326507024  ;;  %v329_v13 = vsel %vm327_vm12, %v328_v47, %v3900_v4  ;;  %v497_v1 = vor.u32 %v496_v53, %v495_v50  ;;  %v596_v18 = vand.u32 31, %v594_v61 }
  0xb9   : > { %v325_v20 = vmul.u32 %v3876_v40, %v309_v24  ;;  %v411_v21 = vsel %vm409_vm7, %v399_v59, 2102212464  ;;  %v519_v2 = vsel %vm513_vm13, %v506_v56, 920167782  ;;  %v486_v23 = vor.u32 8388608, %v485_v7 }
  0xba   : > { %vm511_vm0 = vcmp.lt.s32.totalorder %v3930_v28, 2  ;;  %v522_v26 = vsel %vm510_vm14, %v3963_v6, %v503_v9  ;;  %v524_v4 = vsel %vm512_vm15, %v506_v56, %v523_v10  ;;  %v410_v40 = vsel %vm406_vm8, %v390_v46, %v3888_v57 }
  0xbb   : > { %v330_v3 = vadd.s32 %v329_v13, %v325_v20  ;;  %v412_v59 = vsel %vm408_vm9, %v3890_v58, %v411_v21  ;;  %v518_v7 = vsel %vm510_vm14, %v497_v1, %v3963_v6  ;;  %v520_v29 = vsel %vm512_vm15, %v503_v9, %v519_v2  ;;  %v4031_v21 = vpop.permute.xlu0 %1579 }
  0xbc   : > { %v3997_v30 = vsub.s32 32, %v596_v18  ;;  %v432_v31 = vadd.s32 1, %v3956_v42  ;;  %v525_v0 = vsel %vm511_vm0, %v522_v26, %v524_v4  ;;  %vm431_vm1 = vc.u32 %v3961_v5, %v3955_v48 }
  0xbd   : > { %v4004_v57 = vshll.u32 %v486_v23, 8  ;;  %v331_v58 = vadd.s32 536870912, %v330_v3  ;;  %v413_v34 = vsel %vm407_vm10, %v410_v40, %v412_v59  ;;  %v521_v36 = vsel %vm511_vm0, %v518_v7, %v520_v29 }
  0xbe   : > { %v5932_v24 = vand.u32 2147483647, %v3819_v44  ;;  %v608_v47 = vshll.u32 %v5936_v45, %v596_v18  ;;  %v609_v50 = vshrl.u32 %v5951_v37, %v3997_v30  ;;  %v433_v53 = vsel %vm431_vm1, %v432_v31, %v3956_v42 }
  0xbf   : > { %v4012_v38 = vmul.u32.u64.low %v4004_v57, %v525_v0  ;;  %v4013_v43 = vmul.u32.u64.high %v4004_v57, %v525_v0, %v4012_v38  ;;  %v4019_v56 = vshrl.u32 %v594_v61, 5  ;;  %v611_v8 = vshll.u32 %v5951_v37, %v596_v18 }
  0xc0   : > { %v612_v33 = vshrl.u32 %v5943_v39, %v3997_v30  ;;  %v4025_v46 = vmul.u32.u64.low %v4004_v57, %v521_v36  ;;  %v4026_v10 = vmul.u32.u64.high %v4004_v57, %v521_v36, %v4025_v46  ;;  %v599_v13 = vshll.u32 %v5956_v55, %v596_v18 }
  0xc1   : > { %v602_v20 = vshll.u32 %v5941_v49, %v596_v18  ;;  %v600_v42 = vshrl.u32 %v5941_v49, %v3997_v30  ;;  %v603_v61 = vshrl.u32 %v5939_v51, %v3997_v30  ;;  %v605_v2 = vshll.u32 %v5939_v51, %v596_v18 }
  0xc2   : > { %v606_v23 = vshrl.u32 %v5936_v45, %v3997_v30  ;;  %v429_v26 = vmul.u32 %v3918_v16, %v413_v34  ;;  %v610_v4 = vor.u32 %v609_v50, %v608_v47  ;;  %v4041_v40 = vshrl.u32 %v331_v58, 30  ;;  %v4054_v16 = vpop.permute.xlu0 %711 }
  0xc3   : > { %v494_v59 = vshrl.u32 %v5956_v55, %v3896_v62  ;;  %v613_v7 = vor.u32 %v612_v33, %v611_v8  ;;  %vm617_vm2 = vcmp.lt.s32.totalorder %v4019_v56, 4  ;;  %v515_v31 = vsel %vm513_vm13, %v503_v9, 2102212464 }
  0xc4   : > { %v434_v29 = vadd.s32 %v433_v53, %v429_v26  ;;  %v589_v18 = vand.u32 8388607, %v5932_v24  ;;  %v601_v0 = vor.u32 %v600_v42, %v599_v13  ;;  %v604_v36 = vor.u32 %v603_v61, %v602_v20 }
  0xc5   : > { %v607_v38 = vor.u32 %v606_v23, %v605_v2  ;;  %vm614_vm3 = vcmp.lt.s32.totalorder %v4019_v56, 1  ;;  %vm616_vm4 = vcmp.lt.s32.totalorder %v4019_v56, 3  ;;  %v623_v62 = vsel %vm617_vm2, %v610_v4, 920167782 }
  0xc6   : > { %v333_v58 = vshll.u32 %v4041_v40, 30  ;;  %v514_v9 = vsel %vm510_vm14, %v494_v59, %v497_v1  ;;  %v516_v34 = vsel %vm512_vm15, %v3963_v6, %v515_v31  ;;  %v627_v47 = vsel %vm617_vm2, %v613_v7, 1326507024 }
  0xc7   : > { %v435_v50 = vadd.s32 536870912, %v434_v29  ;;  %v536_v53 = vadd.s32 1, %v4026_v10  ;;  %v590_v8 = vor.u32 8388608, %v589_v18  ;;  %vm535_vm5 = vc.u32 %v4013_v43, %v4025_v46 }
  0xc8   : > { %vm615_vm6 = vcmp.lt.s32.totalorder %v4019_v56, 2  ;;  %v622_v33 = vsel %vm614_vm3, %v601_v0, %v604_v36  ;;  %v624_v1 = vsel %vm616_vm4, %v607_v38, %v623_v62  ;;  %v517_v6 = vsel %vm511_vm0, %v514_v9, %v516_v34 }
  0xc9   : > { %v626_v13 = vsel %vm614_vm3, %v604_v36, %v607_v38  ;;  %v628_v20 = vsel %vm616_vm4, %v610_v4, %v627_v47  ;;  %v4080_v42 = vmul.f32 %v4054_v16, %v3781_v12  ;;  %v4082_v61 = vsub.s32 %v330_v3, %v333_v58 }
  0xca   : > { %v537_v2 = vsel %vm535_vm5, %v536_v53, %v4026_v10  ;;  %v625_v23 = vsel %vm615_vm6, %v622_v33, %v624_v1  ;;  %v533_v28 = vmul.u32 %v4004_v57, %v517_v6  ;;  %v629_v26 = vsel %vm615_vm6, %v626_v13, %v628_v20 }
  0xcb   : > { %v630_v59 = vshll.u32 %v590_v8, 8  ;;  %v4090_v7 = vshrl.u32 %v435_v50, 30  ;;  %v721_v4 = vand.u32 2139095040, %v4080_v42  ;;  %v336_v31 = vsub.s32 0, %v4082_v61 }
  0xcc   : > { %v538_v18 = vadd.s32 %v537_v2, %v533_v28  ;;  %v598_v34 = vshrl.u32 %v5956_v55, %v3997_v30  ;;  %v619_v8 = vsel %vm617_vm2, %v607_v38, 2102212464  ;;  %vm272_vm1 = vcmp.lt.s32.totalorder %v3786_v15, 0 }
  0xcd   : > { %v4094_v3 = vmul.u32.u64.low %v630_v59, %v625_v23  ;;  %v4095_v62 = vmul.u32.u64.high %v630_v59, %v625_v23, %v4094_v3  ;;  %v4098_v10 = vmul.u32.u64.low %v630_v59, %v629_v26  ;;  %v4099_v58 = vmul.u32.u64.high %v630_v59, %v629_v26, %v4098_v10 }
  0xce   : > { %v722_v9 = vshrl.u32 %v721_v4, 23  ;;  %v437_v57 = vshll.u32 %v4090_v7, 30  ;;  %v3318_v50 = vmin.u32 %v336_v31, %v4082_v61  ;;  %v539_v53 = vadd.s32 536870912, %v538_v18 }
  0xcf   : > { %v618_v6 = vsel %vm614_vm3, %v598_v34, %v601_v0  ;;  %v620_v13 = vsel %vm616_vm4, %v604_v36, %v619_v8  ;;  %v640_v30 = vadd.s32 1, %v4095_v62  ;;  %vm639_vm8 = vc.u32 %v4099_v58, %v4094_v3 }
  0xd0   : > { %v3333_v47 = vadd.s32 4294967169, %v722_v9  ;;  %v4107_v1 = vsub.s32 %v434_v29, %v437_v57  ;;  %v338_v20 = vclz %v3318_v50  ;;  %v4113_v2 = vshrl.u32 %v539_v53, 30 }
  0xd1   : > { %v4120_v29 = vmul.f32 %v4054_v16, %v3790_v17  ;;  %v621_v0 = vsel %vm615_vm6, %v618_v6, %v620_v13  ;;  %v641_v31 = vsel %vm639_vm8, %v640_v30, %v4095_v62  ;;  %v5938_v53 = vand.u32 2147483647, %v4080_v42 }
  0xd2   : > { %v728_v33 = vadd.s32 1, %v3333_v47  ;;  %v440_v36 = vsub.s32 0, %v4107_v1  ;;  %v3319_v26 = vadd.s32 4294967294, %v338_v20  ;;  %v541_v4 = vshll.u32 %v4113_v2, 30 }
  0xd3   : > { %v637_v10 = vmul.u32 %v630_v59, %v621_v0  ;;  %v825_v9 = vand.u32 2139095040, %v4120_v29  ;;  %v725_v24 = vand.u32 8388607, %v5938_v53  ;;  %v5994_v14 = vand.u32 2147483647, %v4120_v29 }
  0xd4   : > { %vm729_vm7 = vcmp.gt.s32.totalorder %v728_v33, 0  ;;  %v3322_v57 = vmin.u32 %v440_v36, %v4107_v1  ;;  %vm3320_vm9 = vcmp.lt.s32.totalorder %v3319_v26, 0  ;;  %v4133_v56 = vsub.s32 %v538_v18, %v541_v4 }
  0xd5   : > { %v730_v23 = vsel %vm729_vm7, %v728_v33, 0  ;;  %v642_v34 = vadd.s32 %v641_v31, %v637_v10  ;;  %v826_v62 = vshrl.u32 %v825_v9, 23  ;;  %v341_v10 = vsel %vm3320_vm9, 0, %v3319_v26 }
  0xd6   : > { %v732_v38 = vand.u32 31, %v730_v23  ;;  %v4138_v8 = vshrl.u32 %v730_v23, 5  ;;  %v442_v20 = vclz %v3322_v57  ;;  %v544_v9 = vsub.s32 0, %v4133_v56 }
  0xd7   : > { %v643_v30 = vadd.s32 536870912, %v642_v34  ;;  %v3337_v52 = vadd.s32 4294967169, %v826_v62 }
  0xd8   : > { %v4125_v28 = vsub.s32 32, %v732_v38  ;;  %v744_v59 = vshll.u32 %v5936_v45, %v732_v38  ;;  %v747_v13 = vshll.u32 %v5951_v37, %v732_v38  ;;  %v735_v23 = vshll.u32 %v5956_v55, %v732_v38 }
  0xd9   : > { %v738_v36 = vshll.u32 %v5941_v49, %v732_v38  ;;  %v741_v4 = vshll.u32 %v5939_v51, %v732_v38  ;;  %vm753_vm10 = vcmp.lt.s32.totalorder %v4138_v8, 4  ;;  %v4158_v38 = vshrl.u32 %v643_v30, 30 }
  0xda   : > { %v745_v47 = vshrl.u32 %v5951_v37, %v4125_v28  ;;  %v748_v50 = vshrl.u32 %v5943_v39, %v4125_v28  ;;  %v736_v33 = vshrl.u32 %v5941_v49, %v4125_v28  ;;  %v739_v6 = vshrl.u32 %v5939_v51, %v4125_v28 }
  0xdb   : > { %v742_v18 = vshrl.u32 %v5936_v45, %v4125_v28  ;;  %v3323_v45 = vadd.s32 4294967294, %v442_v20  ;;  %vm750_vm11 = vcmp.lt.s32.totalorder %v4138_v8, 1  ;;  %vm752_vm12 = vcmp.lt.s32.totalorder %v4138_v8, 3 }
  0xdc   : > { %v746_v0 = vor.u32 %v745_v47, %v744_v59  ;;  %v749_v31 = vor.u32 %v748_v50, %v747_v13  ;;  %v737_v60 = vor.u32 %v736_v33, %v735_v23  ;;  %v740_v41 = vor.u32 %v739_v6, %v738_v36 }
  0xdd   : > { %v743_v57 = vor.u32 %v742_v18, %v741_v4  ;;  %v346_v59 = vsub.s32 4294967266, %v341_v10  ;;  %v3326_v50 = vmin.u32 %v544_v9, %v4133_v56  ;;  %v832_v62 = vadd.s32 1, %v3337_v52 }
  0xde   : > { %v759_v47 = vsel %vm753_vm10, %v746_v0, 920167782  ;;  %v763_v26 = vsel %vm753_vm10, %v749_v31, 1326507024  ;;  %v726_v33 = vor.u32 8388608, %v725_v24  ;;  %v758_v6 = vsel %vm750_vm11, %v737_v60, %v740_v41 }
  0xdf   : > { %v760_v18 = vsel %vm752_vm12, %v743_v57, %v759_v47  ;;  %v342_v13 = vsub.s32 32, %v341_v10  ;;  %v762_v20 = vsel %vm750_vm11, %v740_v41, %v743_v57  ;;  %v764_v30 = vsel %vm752_vm12, %v746_v0, %v763_v26 }
  0xe0   : > { %v326_v23 = vadd.s32 %v3899_v63, %v3886_v54  ;;  %vm3324_vm13 = vcmp.lt.s32.totalorder %v3323_v45, 0  ;;  %v645_v52 = vshll.u32 %v4158_v38, 30  ;;  %vm751_vm14 = vcmp.lt.s32.totalorder %v4138_v8, 2 }
  0xe1   : > { %v347_v24 = vadd.s32 127, %v346_v59  ;;  %v546_v36 = vclz %v3326_v50  ;;  %v761_v4 = vsel %vm751_vm14, %v758_v6, %v760_v18  ;;  %vm833_vm15 = vcmp.gt.s32.totalorder %v832_v62, 0 }
  0xe2   : > { %v765_v31 = vsel %vm751_vm14, %v762_v20, %v764_v30  ;;  %v766_v9 = vshll.u32 %v726_v33, 8  ;;  %v344_v47 = vshrl.u32 %v326_v23, %v342_v13  ;;  %v4181_v0 = vsel %vm3324_vm13, 0, %v3323_v45 }
  0xe3   : > { %v4183_v26 = vsub.s32 %v642_v34, %v645_v52  ;;  %v834_v53 = vsel %vm833_vm15, %v832_v62, 0  ;;  %v348_v59 = vshll.u32 %v347_v24, 23  ;;  %v3327_v50 = vadd.s32 4294967294, %v546_v36 }
  0xe4   : > { %v4185_v54 = vmul.u32.u64.low %v766_v9, %v761_v4  ;;  %v4186_v63 = vmul.u32.u64.high %v766_v9, %v761_v4, %v4185_v54  ;;  %v4189_v51 = vmul.u32.u64.low %v766_v9, %v765_v31  ;;  %v4190_v49 = vmul.u32.u64.high %v766_v9, %v765_v31, %v4189_v51 }
  0xe5   : > { %v343_v6 = vshll.u32 %v4082_v61, %v341_v10  ;;  %v450_v18 = vsub.s32 4294967266, %v4181_v0  ;;  %v836_v33 = vand.u32 31, %v834_v53  ;;  %v356_v45 = vsub.s32 4, %v4041_v40 }
  0xe6   : > { %v648_v34 = vsub.s32 0, %v4183_v26  ;;  %v755_v13 = vsel %vm753_vm10, %v743_v57, 2102212464  ;;  %v349_v30 = vor.u32 4788187, %v348_v59  ;;  %vm3328_vm0 = vcmp.lt.s32.totalorder %v3327_v50, 0 }
  0xe7   : > { %v345_v20 = vor.u32 %v344_v47, %v343_v6  ;;  %v734_v62 = vshrl.u32 %v5956_v55, %v4125_v28  ;;  %v430_v51 = vadd.s32 %v3955_v48, %v3961_v5  ;;  %v446_v61 = vsub.s32 32, %v4181_v0 }
  0xe8   : > { %v451_v10 = vadd.s32 127, %v450_v18  ;;  %v756_v57 = vsel %vm752_vm12, %v740_v41, %v755_v13  ;;  %v4208_v52 = vsub.s32 32, %v836_v33  ;;  %v4210_v24 = vsel %vm3328_vm0, 0, %v3327_v50 }
  0xe9   : > { %v754_v23 = vsel %vm750_vm11, %v734_v62, %v737_v60  ;;  %v3330_v28 = vmin.u32 %v648_v34, %v4183_v26  ;;  %v4215_v36 = vmul.f32 %v4054_v16, %v3799_v25  ;;  %v776_v48 = vadd.s32 1, %v4186_v63 }
  0xea   : > { %v350_v5 = vand.u32 2147483647, %v349_v30  ;;  %v352_v4 = vcvt.s32.f32 %v345_v20  ;;  %v4221_v60 = vsel %vm272_vm1, %v356_v45, %v4041_v40  ;;  %vm775_vm2 = vc.u32 %v4190_v49, %v4185_v54 }
  0xeb   : > { %5990 = vst [vmem:[#allocation11_spill] sm:$0xff] %v4215_v36  ;;  %v447_v41 = vshll.u32 %v4107_v1, %v4181_v0  ;;  %v448_v31 = vshrl.u32 %v430_v51, %v446_v61  ;;  %v534_v47 = vadd.s32 %v4025_v46, %v4013_v43  ;;  %v757_v59 = vsel %vm751_vm14, %v754_v23, %v756_v57 }
  0xec   : > { %v452_v50 = vshll.u32 %v451_v10, 23  ;;  %v554_v6 = vsub.s32 4294967266, %v4210_v24  ;;  %v849_v40 = vshrl.u32 %v5951_v37, %v4208_v52  ;;  %v650_v45 = vclz %v3330_v28 }
  0xed   : > { %v777_v34 = vsel %vm775_vm2, %v776_v48, %v4186_v63  ;;  %v852_v1 = vshrl.u32 %v5943_v39, %v4208_v52  ;;  %v929_v0 = vand.u32 2139095040, %v4215_v36  ;;  %v773_v43 = vmul.u32 %v766_v9, %v757_v59 }
  0xee   : > { %v4239_v46 = vshrl.u32 %v834_v53, 5  ;;  %v5991_v8 = vmov 2475754826   ;;  %v5992_v20 = vmov 2102212464   ;;  %v851_v63 = vshll.u32 %v5951_v37, %v836_v33 }
  0xef   : > { %v840_v13 = vshrl.u32 %v5991_v8, %v4208_v52  ;;  %v848_v30 = vshll.u32 %v5992_v20, %v836_v33  ;;  %v5993_v62 = vmov 2131351028   ;;  %v846_v61 = vshrl.u32 %v5992_v20, %v4208_v52 }
  0xf0   : > { %v843_v51 = vshrl.u32 %v5993_v62, %v4208_v52  ;;  %v930_v10 = vshrl.u32 %v929_v0, 23  ;;  %v555_v23 = vadd.s32 127, %v554_v6  ;;  %v4249_v57 = vadd.s32 %v777_v34, %v773_v43 }
  0xf1   : > { %v839_v53 = vshll.u32 %v5956_v55, %v836_v33  ;;  %v850_v9 = vor.u32 %v849_v40, %v848_v30  ;;  %v842_v28 = vshll.u32 %v5991_v8, %v836_v33  ;;  %v845_v48 = vshll.u32 %v5993_v62, %v836_v33 }
  0xf2   : > { %v853_v59 = vor.u32 %v852_v1, %v851_v63  ;;  %v3341_v39 = vadd.s32 4294967169, %v930_v10  ;;  %v353_v18 = vmul.f32 %v352_v4, %v350_v5  ;;  %v550_v32 = vsub.s32 32, %v4210_v24 }
  0xf3   : > { %v3331_v22 = vadd.s32 4294967294, %v650_v45  ;;  %v829_v37 = vand.u32 8388607, %v5994_v14  ;;  %v841_v0 = vor.u32 %v840_v13, %v839_v53  ;;  %v844_v6 = vor.u32 %v843_v51, %v842_v28 }
  0xf4   : > { %v847_v34 = vor.u32 %v846_v61, %v845_v48  ;;  %vm857_vm3 = vcmp.lt.s32.totalorder %v4239_v46, 4  ;;  %v449_v43 = vor.u32 %v448_v31, %v447_v41  ;;  %v453_v40 = vor.u32 4788187, %v452_v50 }
  0xf5   : > { %v556_v30 = vshll.u32 %v555_v23, 23  ;;  %v863_v33 = vsel %vm857_vm3, %v850_v9, 920167782  ;;  %v4262_v5 = vmul.f32 %v4054_v16, %v3810_v35  ;;  %v779_v4 = vadd.s32 536870912, %v4249_v57 }
  0xf6   : > { %v867_v14 = vsel %vm857_vm3, %v853_v59, 1326507024  ;;  %v936_v45 = vadd.s32 1, %v3341_v39  ;;  %v552_v1 = vshrl.u32 %v534_v47, %v550_v32  ;;  %vm3332_vm4 = vcmp.lt.s32.totalorder %v3331_v22, 0 }
  0xf7   : > { %vm854_vm5 = vcmp.lt.s32.totalorder %v4239_v46, 1  ;;  %vm856_vm6 = vcmp.lt.s32.totalorder %v4239_v46, 3  ;;  %v830_v41 = vor.u32 8388608, %v829_v37  ;;  %v551_v50 = vshll.u32 %v4133_v56, %v4210_v24 }
  0xf8   : > { %v862_v31 = vsel %vm854_vm5, %v841_v0, %v844_v6  ;;  %v864_v16 = vsel %vm856_vm6, %v847_v34, %v863_v33  ;;  %vm937_vm7 = vcmp.gt.s32.totalorder %v936_v45, 0  ;;  %v557_v13 = vor.u32 4788187, %v556_v30 }
  0xf9   : > { %v866_v32 = vsel %vm854_vm5, %v844_v6, %v847_v34  ;;  %v868_v39 = vsel %vm856_vm6, %v850_v9, %v867_v14  ;;  %v4279_v47 = vsel %vm3332_vm4, 0, %v3331_v22  ;;  %v4281_v37 = vshrl.u32 %v779_v4, 30 }
  0xfa   : > { %vm855_vm8 = vcmp.lt.s32.totalorder %v4239_v46, 2  ;;  %v938_v51 = vsel %vm937_vm7, %v936_v45, 0  ;;  %v5995_v61 = vand.u32 2147483647, %v3786_v15  ;;  %v354_v56 = vxor.u32 2147483648, %v353_v18 }
  0xfb   : > { %v553_v24 = vor.u32 %v552_v1, %v551_v50  ;;  %v865_v10 = vsel %vm855_vm8, %v862_v31, %v864_v16  ;;  %v454_v23 = vand.u32 2147483647, %v453_v40  ;;  %v869_v22 = vsel %vm855_vm8, %v866_v32, %v868_v39 }
  0xfc   : > { %vm4286_vm9 = vcmp.le.f32.partialorder %v5995_v61, 0.7853982  ;;  %v4294_v53 = vshll.u32 %v830_v41, 8  ;;  %v1033_v9 = vand.u32 2139095040, %v4262_v5  ;;  %v558_v48 = vand.u32 2147483647, %v557_v13 }
  0xfd   : > { %v359_v28 = vsel %vm4286_vm9, 0, %v4221_v60  ;;  %v658_v59 = vsub.s32 4294967266, %v4279_v47  ;;  %v940_v30 = vand.u32 31, %v938_v51  ;;  %v456_v33 = vcvt.s32.f32 %v449_v43 }
  0xfe   : > { %v781_v4 = vshll.u32 %v4281_v37, 30  ;;  %v4303_v40 = vmul.u32.u64.low %v4294_v53, %v865_v10  ;;  %v4304_v14 = vmul.u32.u64.high %v4294_v53, %v865_v10, %v4303_v40  ;;  %v460_v45 = vsub.s32 4, %v4090_v7 }
  0xff   : > { %v560_v1 = vcvt.s32.f32 %v553_v24  ;;  %v4309_v41 = vmul.u32.u64.low %v4294_v53, %v869_v22  ;;  %v4310_v31 = vmul.u32.u64.high %v4294_v53, %v869_v22, %v4309_v41  ;;  %v355_v60 = vsel %vm272_vm1, %v354_v56, %v353_v18 }
 0x100   : > { %v457_v16 = vmul.f32 %v456_v33, %v454_v23  ;;  %v859_v43 = vsel %vm857_vm3, %v847_v34, 2102212464  ;;  %v1034_v50 = vshrl.u32 %v1033_v9, 23  ;;  %v659_v32 = vadd.s32 127, %v658_v59 }
 0x101   : > { %v561_v13 = vmul.f32 %v560_v1, %v558_v48  ;;  %v838_v39 = vshrl.u32 %v5956_v55, %v4208_v52  ;;  %v4318_v61 = vsub.s32 32, %v940_v30  ;;  %vm376_vm10 = vcmp.lt.s32.totalorder %v3793_v19, 0 }
 0x102   : > { %v4322_v24 = vsub.s32 %v4249_v57, %v781_v4  ;;  %v4324_v10 = vadd.s32 3, %v359_v28  ;;  %v461_v18 = vsel %vm376_vm10, %v460_v45, %v4090_v7  ;;  %v860_v56 = vsel %vm856_vm6, %v844_v6, %v859_v43 }
 0x103   : > { %v858_v34 = vsel %vm854_vm5, %v838_v39, %v841_v0  ;;  %v358_v52 = vsel %vm4286_vm9, %v3786_v15, %v355_v60  ;;  %v5998_v23 = vand.u32 2147483647, %v3793_v19  ;;  %v458_v22 = vxor.u32 2147483648, %v457_v16 }
 0x104   : > { %v638_v7 = vadd.s32 %v4094_v3, %v4099_v58  ;;  %v3345_v9 = vadd.s32 4294967169, %v1034_v50  ;;  %vm480_vm12 = vcmp.lt.s32.totalorder %v3802_v27, 0  ;;  %v562_v0 = vxor.u32 2147483648, %v561_v13 }
 0x105   : > { %vm4338_vm11 = vcmp.le.f32.partialorder %v5998_v23, 0.7853982  ;;  %v654_v6 = vsub.s32 32, %v4279_v47  ;;  %v660_v28 = vshll.u32 %v659_v32, 23  ;;  %v6001_v63 = vmov 920167782  }
 0x106   : > { %v953_v48 = vshrl.u32 %v6001_v63, %v4318_v61  ;;  %v784_v59 = vsub.s32 0, %v4322_v24  ;;  %v861_v33 = vsel %vm855_vm8, %v858_v34, %v860_v56  ;;  %v880_v4 = vadd.s32 1, %v4304_v14 }
 0x107   : > { %vm879_vm13 = vc.u32 %v4310_v31, %v4303_v40  ;;  %v944_v3 = vshrl.u32 %v5991_v8, %v4318_v61  ;;  %v952_v58 = vshll.u32 %v5992_v20, %v940_v30  ;;  %v6002_v1 = vmov 1326507024  }
 0x108   : > { %v956_v41 = vshrl.u32 %v6002_v1, %v4318_v61  ;;  %v4360_v60 = vshrl.u32 %v938_v51, 5  ;;  %v947_v46 = vshrl.u32 %v5993_v62, %v4318_v61  ;;  %v950_v43 = vshrl.u32 %v5992_v20, %v4318_v61 }
 0x109   : > { %v1040_v50 = vadd.s32 1, %v3345_v9  ;;  %v877_v32 = vmul.u32 %v4294_v53, %v861_v33  ;;  %v943_v39 = vshll.u32 %v5956_v55, %v940_v30  ;;  %v954_v34 = vor.u32 %v953_v48, %v952_v58 }
 0x10a   : > { %v955_v56 = vshll.u32 %v6001_v63, %v940_v30  ;;  %v6003_v23 = vand.u32 2147483647, %v3802_v27  ;;  %v3334_v51 = vmin.u32 %v784_v59, %v4322_v24  ;;  %v881_v11 = vsel %vm879_vm13, %v880_v4, %v4304_v14 }
 0x10b   : > { %v946_v35 = vshll.u32 %v5991_v8, %v940_v30  ;;  %v949_v9 = vshll.u32 %v5993_v62, %v940_v30  ;;  %v6006_v53 = vand.u32 2147483647, %v4215_v36  ;;  %v4381_v48 = vor.u32 %v944_v3, %v943_v39 }
 0x10c   : > { %vm4371_vm14 = vcmp.le.f32.partialorder %v6003_v23, 0.7853982  ;;  %v957_v58 = vor.u32 %v956_v41, %v955_v56  ;;  %vm1041_vm15 = vcmp.gt.s32.totalorder %v1040_v50, 0  ;;  %vm961_vm0 = vcmp.lt.s32.totalorder %v4360_v60, 4 }
 0x10d   : > { %v933_v33 = vand.u32 8388607, %v6006_v53  ;;  %v4383_v55 = vor.u32 %v947_v46, %v946_v35  ;;  %v4385_v23 = vor.u32 %v950_v43, %v949_v9  ;;  %v1042_v59 = vsel %vm1041_vm15, %v1040_v50, 0 }
 0x10e   : > { %v463_v14 = vsel %vm4338_vm11, 0, %v461_v18  ;;  %v4390_v4 = vadd.s32 %v881_v11, %v877_v32  ;;  %v967_v30 = vsel %vm961_vm0, %v954_v34, 920167782  ;;  %v1044_v53 = vand.u32 31, %v1042_v59 }
 0x10f   : > { %3527 = vcosq.f32 %v358_v52  ;;  %v459_v3 = vsel %vm376_vm10, %v458_v22, %v457_v16  ;;  %v563_v35 = vsel %vm480_vm12, %v562_v0, %v561_v13  ;;  %v656_v41 = vshrl.u32 %v638_v7, %v654_v6 }
 0x110   : > { %v661_v46 = vor.u32 4788187, %v660_v28  ;;  %vm958_vm1 = vcmp.lt.s32.totalorder %v4360_v60, 1  ;;  %vm960_vm2 = vcmp.lt.s32.totalorder %v4360_v60, 3  ;;  %v971_v11 = vsel %vm961_vm0, %v957_v58, 1326507024 }
 0x111   : > { %v786_v18 = vclz %v3334_v51  ;;  %v934_v43 = vor.u32 8388608, %v933_v33  ;;  %v966_v50 = vsel %vm958_vm1, %v4381_v48, %v4383_v55  ;;  %v968_v16 = vsel %vm960_vm2, %v4385_v23, %v967_v30 }
 0x112   : > { %3529 = vsinq.f32 %v358_v52  ;;  %v4409_v13 = vadd.s32 3, %v463_v14  ;;  %v883_v22 = vadd.s32 536870912, %v4390_v4  ;;  %v4412_v7 = vsub.s32 32, %v1044_v53 }
 0x113   : > { %v655_v0 = vshll.u32 %v4183_v26, %v4279_v47  ;;  %vm959_vm3 = vcmp.lt.s32.totalorder %v4360_v60, 2  ;;  %v970_v6 = vsel %vm958_vm1, %v4383_v55, %v4385_v23  ;;  %v972_v28 = vsel %vm960_vm2, %v954_v34, %v971_v11 }
 0x114   : > { %v462_v52 = vsel %vm4338_vm11, %v3793_v19, %v459_v3  ;;  %v564_v32 = vsub.s32 4, %v4113_v2  ;;  %v566_v26 = vsel %vm4371_vm14, %v3802_v27, %v563_v35  ;;  %v969_v47 = vsel %vm959_vm3, %v966_v50, %v968_v16 }
 0x115   : > { %v657_v39 = vor.u32 %v656_v41, %v655_v0  ;;  %v662_v56 = vand.u32 2147483647, %v661_v46  ;;  %v3335_v51 = vadd.s32 4294967294, %v786_v18  ;;  %v4432_v9 = vshll.u32 %v934_v43, 8 }
 0x116   : > { %v4434_v33 = vshrl.u32 %v883_v22, 30  ;;  %v973_v57 = vsel %vm959_vm3, %v970_v6, %v972_v28  ;;  %v1057_v58 = vshrl.u32 %v6001_v63, %v4412_v7  ;;  %v1048_v3 = vshrl.u32 %v5991_v8, %v4412_v7 }
 0x117   : > { %v4442_v14 = vmul.u32.u64.low %v4432_v9, %v969_v47  ;;  %v4443_v30 = vmul.u32.u64.high %v4432_v9, %v969_v47, %v4442_v14  ;;  %v1060_v35 = vshrl.u32 %v6002_v1, %v4412_v7  ;;  %v1051_v41 = vshrl.u32 %v5993_v62, %v4412_v7 }
 0x118   : > { %v1054_v46 = vshrl.u32 %v5992_v20, %v4412_v7  ;;  %v1056_v11 = vshll.u32 %v5992_v20, %v1044_v53  ;;  %v1059_v18 = vshll.u32 %v6001_v63, %v1044_v53  ;;  %v4460_v16 = vshrl.u32 %v1042_v59, 5 }
 0x119   : > { %v4457_v43 = vmul.u32.u64.low %v4432_v9, %v973_v57  ;;  %v4458_v50 = vmul.u32.u64.high %v4432_v9, %v973_v57, %v4457_v43  ;;  %v6007_v22 = vmov 683565275   ;;  %v1050_v6 = vshll.u32 %v5991_v8, %v1044_v53 }
 0x11a   : > { %v1047_v0 = vshll.u32 %v6007_v22, %v1044_v53  ;;  %v1053_v28 = vshll.u32 %v5993_v62, %v1044_v53  ;;  %v1058_v47 = vor.u32 %v1057_v58, %v1056_v11  ;;  %v1061_v34 = vor.u32 %v1060_v35, %v1059_v18 }
 0x11b   : > { %3531 = vcosq.f32 %v462_v52  ;;  %v664_v36 = vcvt.s32.f32 %v657_v39  ;;  %v885_v25 = vshll.u32 %v4434_v33, 30  ;;  %v6008_v1 = vand.u32 2147483647, %v4262_v5 }
 0x11c   : > { %v4468_v63 = vpop.eup %3527  ;;  %3533 = vsinq.f32 %v462_v52  ;;  %vm584_vm4 = vcmp.lt.s32.totalorder %v3819_v44, 0  ;;  %v4471_v59 = vor.u32 %v1048_v3, %v1047_v0  ;;  %v4473_v57 = vor.u32 %v1051_v41, %v1050_v6 }
 0x11d   : > { %v1037_v20 = vand.u32 8388607, %v6008_v1  ;;  %v1055_v43 = vor.u32 %v1054_v46, %v1053_v28  ;;  %3535 = vcosq.f32 %v566_v26  ;;  %v665_v53 = vmul.f32 %v664_v36, %v662_v56 }
 0x11e   : > { %v963_v39 = vsel %vm961_vm0, %v4385_v23, 2102212464  ;;  %vm1065_vm5 = vcmp.lt.s32.totalorder %v4460_v16, 4  ;;  %vm3336_vm6 = vcmp.lt.s32.totalorder %v3335_v51, 0  ;;  %v942_v1 = vshrl.u32 %v6007_v22, %v4318_v61 }
 0x11f   : > { %v1071_v52 = vsel %vm1065_vm5, %v1058_v47, 920167782  ;;  %v1075_v58 = vsel %vm1065_vm5, %v1061_v34, 1326507024  ;;  %v4485_v3 = vpop.eup %3529  ;;  %v4488_v36 = vsub.s32 %v4390_v4, %v885_v25  ;;  %v1038_v56 = vor.u32 8388608, %v1037_v20 }
 0x120   : > { %vm1062_vm7 = vcmp.lt.s32.totalorder %v4460_v16, 1  ;;  %vm1064_vm8 = vcmp.lt.s32.totalorder %v4460_v16, 3  ;;  %v962_v61 = vsel %vm958_vm1, %v942_v1, %v4381_v48  ;;  %v964_v23 = vsel %vm960_vm2, %v4383_v55, %v963_v39 }
 0x121   : > { %v1070_v34 = vsel %vm1062_vm7, %v4471_v59, %v4473_v57  ;;  %v1072_v25 = vsel %vm1064_vm8, %v1055_v43, %v1071_v52  ;;  %v666_v20 = vxor.u32 2147483648, %v665_v53  ;;  %v984_v4 = vadd.s32 1, %v4443_v30 }
 0x122   : > { %v1074_v35 = vsel %vm1062_vm7, %v4473_v57, %v1055_v43  ;;  %v1076_v48 = vsel %vm1064_vm8, %v1058_v47, %v1075_v58  ;;  %v565_v55 = vsel %vm480_vm12, %v564_v32, %v4113_v2  ;;  %3537 = vsinq.f32 %v566_v26 }
 0x123   : > { %vm983_vm9 = vc.u32 %v4458_v50, %v4442_v14  ;;  %vm1063_vm10 = vcmp.lt.s32.totalorder %v4460_v16, 2  ;;  %v4517_v41 = vand.u32 3, %v4324_v10  ;;  %v4520_v46 = vsel %vm3336_vm6, 0, %v3335_v51 }
 0x124   : > { %v965_v11 = vsel %vm959_vm3, %v962_v61, %v964_v23  ;;  %v1073_v18 = vsel %vm1063_vm10, %v1070_v34, %v1072_v25  ;;  %v4527_v2 = vand.u32 3, %v4409_v13  ;;  %v888_v32 = vsub.s32 0, %v4488_v36 }
 0x125   : > { %v1077_v26 = vsel %vm1063_vm10, %v1074_v35, %v1076_v48  ;;  %v4532_v0 = vshll.u32 %v1038_v56, 8  ;;  %v567_v10 = vsel %vm4371_vm14, 0, %v565_v55  ;;  %v6009_v51 = vand.u32 2147483647, %v3819_v44 }
 0x126   : > { %v667_v13 = vsel %vm584_vm4, %v666_v20, %v665_v53  ;;  %v985_v6 = vsel %vm983_vm9, %v984_v4, %v4443_v30  ;;  %v794_v28 = vsub.s32 4294967266, %v4520_v46  ;;  %v981_v47 = vmul.u32 %v4432_v9, %v965_v11 }
 0x127   : > { %vm4538_vm11 = vcmp.le.f32.partialorder %v6009_v51, 0.7853982  ;;  %v4548_v39 = vmul.u32.u64.low %v4532_v0, %v1073_v18  ;;  %v4549_v1 = vmul.u32.u64.high %v4532_v0, %v1073_v18, %v4548_v39  ;;  %vm366_vm12 = vcmp.eq.s32.totalorder %v4517_v41, 0 }
 0x128   : > { %vm369_vm13 = vcmp.eq.s32.totalorder %v4517_v41, 2  ;;  %v4555_v45 = vmul.u32.u64.low %v4532_v0, %v1077_v26  ;;  %v4556_v52 = vmul.u32.u64.high %v4532_v0, %v1077_v26, %v4555_v45  ;;  %v3532_v53 = vpop.eup %3531  ;;  %vm470_vm14 = vcmp.eq.s32.totalorder %v4527_v2, 0 }
 0x129   : > { %3539 = vrcp.f32 %v3786_v15  ;;  %v3338_v9 = vmin.u32 %v888_v32, %v4488_v36  ;;  %v4561_v30 = vadd.s32 %v985_v6, %v981_v47  ;;  %v3534_v58 = vpop.eup %3533  ;;  %vm473_vm15 = vcmp.eq.s32.totalorder %v4527_v2, 2 }
 0x12a   : > { %v571_v56 = vadd.s32 3, %v567_v10  ;;  %v670_v61 = vsel %vm4538_vm11, %v3819_v44, %v667_v13  ;;  %3541 = vrcp.f32 %v3793_v19  ;;  %v3536_v23 = vpop.eup %3535  ;;  %vm365_vm0 = vcmp.lt.s32.totalorder %v4517_v41, 2 }
 0x12b   : > { %v367_v34 = vxor.u32 2147483648, %v4485_v3  ;;  %v370_v25 = vxor.u32 2147483648, %v4468_v63  ;;  %v795_v20 = vadd.s32 127, %v794_v28  ;;  %v1067_v4 = vsel %vm1065_vm5, %v1055_v43, 2102212464 }
 0x12c   : > { %v474_v35 = vxor.u32 2147483648, %v3532_v53  ;;  %v668_v48 = vsub.s32 4, %v4158_v38  ;;  %v790_v55 = vsub.s32 32, %v4520_v46  ;;  %v1046_v11 = vshrl.u32 %v6007_v22, %v4412_v7 }
 0x12d   : > { %v471_v18 = vxor.u32 2147483648, %v3534_v58  ;;  %3543 = vcosq.f32 %v670_v61  ;;  %v890_v32 = vclz %v3338_v9  ;;  %v987_v26 = vadd.s32 536870912, %v4561_v30 }
 0x12e   : > { %3545 = vsinq.f32 %v670_v61  ;;  %v774_v10 = vadd.s32 %v4185_v54, %v4190_v49  ;;  %v1066_v43 = vsel %vm1062_vm7, %v1046_v11, %v4471_v59  ;;  %v1068_v51 = vsel %vm1064_vm8, %v4473_v57, %v1067_v4 }
 0x12f   : > { %vm362_vm1 = vweird.f32 %v3786_v15  ;;  %v371_v7 = vsel %vm369_vm13, %v370_v25, %v4485_v3  ;;  %v572_v13 = vand.u32 3, %v571_v56  ;;  %v796_v6 = vshll.u32 %v795_v20, 23  ;;  %v3538_v47 = vpop.eup %3537 }
 0x130   : > { %v1088_v28 = vadd.s32 1, %v4549_v1  ;;  %v368_v49 = vsel %vm366_vm12, %v4468_v63, %v367_v34  ;;  %vm466_vm2 = vweird.f32 %v3793_v19  ;;  %v669_v54 = vsel %vm584_vm4, %v668_v48, %v4158_v38 }
 0x131   : > { %v792_v59 = vshrl.u32 %v774_v10, %v790_v55  ;;  %vm1087_vm3 = vc.u32 %v4556_v52, %v4548_v39  ;;  %v3339_v57 = vadd.s32 4294967294, %v890_v32  ;;  %v4600_v3 = vshrl.u32 %v987_v26, 30 }
 0x132   : > { %v1069_v45 = vsel %vm1063_vm10, %v1066_v43, %v1068_v51  ;;  %v4606_v9 = vmul.f32 %v4031_v21, %v3781_v12  ;;  %v472_v63 = vsel %vm470_vm14, %v3532_v53, %v471_v18  ;;  %v475_v38 = vsel %vm473_vm15, %v474_v35, %v3534_v58 }
 0x133   : > { %v578_v56 = vxor.u32 2147483648, %v3536_v23  ;;  %3547 = vrcp.f32 %v3802_v27  ;;  %v575_v61 = vxor.u32 2147483648, %v3538_v47  ;;  %v791_v34 = vshll.u32 %v4322_v24, %v4520_v46 }
 0x134   : > { %6012 = vst [vmem:[#allocation12_spill] sm:$0xff] %v4606_v9  ;;  %v797_v25 = vor.u32 4788187, %v796_v6  ;;  %v1089_v16 = vsel %vm1087_vm3, %v1088_v28, %v4549_v1  ;;  %v372_v12 = vsel %vm365_vm0, %v368_v49, %v371_v7  ;;  %vm469_vm4 = vcmp.lt.s32.totalorder %v4527_v2, 2 }
 0x135   : > { %v671_v53 = vsel %vm4538_vm11, 0, %v669_v54  ;;  %v1085_v58 = vmul.u32 %v4532_v0, %v1069_v45  ;;  %v793_v20 = vor.u32 %v792_v59, %v791_v34  ;;  %vm3340_vm5 = vcmp.lt.s32.totalorder %v3339_v57, 0 }
 0x136   : > { %v989_v4 = vshll.u32 %v4600_v3, 30  ;;  %v1589_v35 = vand.u32 2139095040, %v4606_v9  ;;  %v3540_v24 = vpop.eup %3539  ;;  %v476_v46 = vsel %vm469_vm4, %v472_v63, %v475_v38  ;;  %vm574_vm6 = vcmp.eq.s32.totalorder %v572_v13, 0  ;;  %v4655_v38 = vpop.permute.xlu1 %700 }
 0x137   : > { %vm577_vm7 = vcmp.eq.s32.totalorder %v572_v13, 2  ;;  %v4624_v1 = vadd.s32 %v1089_v16, %v1085_v58  ;;  %v3542_v41 = vpop.eup %3541  ;;  %vm570_vm8 = vweird.f32 %v3802_v27  ;;  %v576_v2 = vsel %vm574_vm6, %v3536_v23, %v575_v61 }
 0x138   : > { %v579_v60 = vsel %vm577_vm7, %v578_v56, %v3538_v47  ;;  %v798_v48 = vand.u32 2147483647, %v797_v25  ;;  %v373_v0 = vsel %vm362_vm1, nan, %v372_v12  ;;  %vm573_vm9 = vcmp.lt.s32.totalorder %v572_v13, 2 }
 0x139   : > { %v675_v55 = vadd.s32 3, %v671_v53  ;;  %v4630_v11 = vsel %vm3340_vm5, 0, %v3339_v57  ;;  %v477_v18 = vsel %vm466_vm2, nan, %v476_v46  ;;  %v800_v32 = vcvt.s32.f32 %v793_v20 }
 0x13a   : > { %v4635_v26 = vsub.s32 %v4561_v30, %v989_v4  ;;  %v1590_v10 = vshrl.u32 %v1589_v35, 23  ;;  %v3544_v43 = vpop.eup %3543  ;;  %v580_v23 = vsel %vm573_vm9, %v576_v2, %v579_v60  ;;  %3549 = vrcp.f32 %v3819_v44 }
 0x13b   : > { %v804_v15 = vsub.s32 4, %v4281_v37  ;;  %v1091_v51 = vadd.s32 536870912, %v4624_v1  ;;  %v3546_v7 = vpop.eup %3545  ;;  %v694_v13 = vmul.f32 %v3540_v24, %v373_v0  ;;  %v801_v6 = vmul.f32 %v800_v32, %v798_v48 }
 0x13c   : > { %v898_v28 = vsub.s32 4294967266, %v4630_v11  ;;  %v3365_v19 = vadd.s32 4294967169, %v1590_v10  ;;  %v676_v47 = vand.u32 3, %v675_v55  ;;  %v695_v49 = vmul.f32 %v3542_v41, %v477_v18 }
 0x13d   : > { %v6013_v30 = vand.u32 2147483647, %v4080_v42  ;;  %vm720_vm11 = vcmp.lt.s32.totalorder %v4080_v42, 0  ;;  %v581_v59 = vsel %vm570_vm8, nan, %v580_v23  ;;  %v992_v57 = vsub.s32 0, %v4635_v26 }
 0x13e   : > { %v4653_v45 = vmul.f32 %v4031_v21, %v3790_v17  ;;  %v1596_v63 = vadd.s32 1, %v3365_v19  ;;  %v679_v56 = vxor.u32 2147483648, %v3546_v7  ;;  %v682_v61 = vxor.u32 2147483648, %v3544_v43 }
 0x13f   : > { %vm4643_vm10 = vcmp.le.f32.partialorder %v6013_v30, 0.7853982  ;;  %v805_v34 = vsel %vm720_vm11, %v804_v15, %v4281_v37  ;;  %v4660_v25 = vshrl.u32 %v1091_v51, 30  ;;  %v4663_v27 = vmul.f32 %v4655_v38, %v694_v13 }
 0x140   : > { %6016 = vst [vmem:[#allocation13_spill] sm:$0xff] %v4653_v45  ;;  %v3548_v16 = vpop.eup %3547  ;;  %v802_v12 = vxor.u32 2147483648, %v801_v6  ;;  %v899_v53 = vadd.s32 127, %v898_v28  ;;  %vm1597_vm12 = vcmp.gt.s32.totalorder %v1596_v63, 0  ;;  %vm678_vm13 = vcmp.eq.s32.totalorder %v676_v47, 0 }
 0x141   : > { %6017 = vst [vmem:[#allocation14_spill] sm:$0xff] %v4663_v27  ;;  %vm681_vm14 = vcmp.eq.s32.totalorder %v676_v47, 2  ;;  %v696_v17 = vmul.f32 %v3548_v16, %v581_v59  ;;  %v1598_v58 = vsel %vm1597_vm12, %v1596_v63, 0  ;;  %v4667_v20 = vsel %vm4643_vm10, 0, %v805_v34 }
 0x142   : > { %v3342_v4 = vmin.u32 %v992_v57, %v4635_v26  ;;  %v1600_v37 = vand.u32 31, %v1598_v58  ;;  %v1693_v35 = vand.u32 2139095040, %v4653_v45  ;;  %v680_v24 = vsel %vm678_vm13, %v3544_v43, %v679_v56 }
 0x143   : > { %v683_v46 = vsel %vm681_vm14, %v682_v61, %v3546_v7  ;;  %v4672_v41 = vmul.f32 %v4655_v38, %v695_v49  ;;  %v1093_v2 = vshll.u32 %v4660_v25, 30  ;;  %v803_v60 = vsel %vm720_vm11, %v802_v12, %v801_v6 }
 0x144   : > { %v894_v48 = vsub.s32 32, %v4630_v11  ;;  %v900_v0 = vshll.u32 %v899_v53, 23  ;;  %v4678_v55 = vsub.s32 32, %v1600_v37  ;;  %vm677_vm15 = vcmp.lt.s32.totalorder %v676_v47, 2 }
 0x145   : > { %6018 = vst [vmem:[#allocation15_spill] sm:$0xff] %v4672_v41  ;;  %v4681_v18 = vmul.f32 %v4655_v38, %v696_v17  ;;  %v811_v32 = vadd.s32 3, %v4667_v20  ;;  %v878_v10 = vadd.s32 %v4303_v40, %v4310_v31  ;;  %vm674_vm0 = vweird.f32 %v3819_v44 }
 0x146   : > { %v684_v43 = vsel %vm677_vm15, %v680_v24, %v683_v46  ;;  %v908_v23 = vsub.s32 4, %v4434_v33  ;;  %v994_v15 = vclz %v3342_v4  ;;  %v1694_v51 = vshrl.u32 %v1693_v35, 23 }
 0x147   : > { %6019 = vst [vmem:[#allocation16_spill] sm:$0xff] %v4681_v18  ;;  %v806_v7 = vsel %vm4643_vm10, %v4080_v42, %v803_v60  ;;  %vm824_vm1 = vcmp.lt.s32.totalorder %v4120_v29, 0  ;;  %v895_v13 = vshll.u32 %v4488_v36, %v4630_v11  ;;  %v4695_v6 = vsub.s32 %v4624_v1, %v1093_v2  ;;  %v4699_v28 = vpop.eup %3549 }
 0x148   : > { %v6020_v40 = vmov 920167782   ;;  %v896_v19 = vshrl.u32 %v878_v10, %v894_v48  ;;  %v901_v47 = vor.u32 4788187, %v900_v0  ;;  %v5965_v49 = vand.u32 2147483647, %v4606_v9 }
 0x149   : > { %v1613_v31 = vshrl.u32 %v6020_v40, %v4678_v55  ;;  %v6021_v30 = vmov 2102212464   ;;  %v4703_v59 = vshrl.u32 %v1598_v58, 5  ;;  %v1604_v57 = vshrl.u32 %v5991_v8, %v4678_v55 }
 0x14a   : > { %v1612_v54 = vshll.u32 %v6021_v30, %v1600_v37  ;;  %v1607_v36 = vshrl.u32 %v5993_v62, %v4678_v55  ;;  %v1610_v1 = vshrl.u32 %v6021_v30, %v4678_v55  ;;  %v3343_v11 = vadd.s32 4294967294, %v994_v15 }
 0x14b   : > { %v6022_v56 = vmov 1326507024   ;;  %v3369_v34 = vadd.s32 4294967169, %v1694_v51  ;;  %v6023_v16 = vand.u32 2147483647, %v4120_v29  ;;  %v1096_v53 = vsub.s32 0, %v4695_v6 }
 0x14c   : > { %v1614_v63 = vor.u32 %v1613_v31, %v1612_v54  ;;  %v1616_v61 = vshrl.u32 %v6022_v56, %v4678_v55  ;;  %v1603_v17 = vshll.u32 %v6007_v22, %v1600_v37  ;;  %v1606_v58 = vshll.u32 %v5991_v8, %v1600_v37 }
 0x14d   : > { %vm4715_vm2 = vcmp.le.f32.partialorder %v6023_v16, 0.7853982  ;;  %v1609_v4 = vshll.u32 %v5993_v62, %v1600_v37  ;;  %3551 = vcosq.f32 %v806_v7  ;;  %v897_v35 = vor.u32 %v896_v19, %v895_v13 }
 0x14e   : > { %v1593_v24 = vand.u32 8388607, %v5965_v49  ;;  %v1615_v46 = vshll.u32 %v6020_v40, %v1600_v37  ;;  %v4726_v2 = vor.u32 %v1604_v57, %v1603_v17  ;;  %v4728_v60 = vor.u32 %v1607_v36, %v1606_v58 }
 0x14f   : > { %v4730_v48 = vor.u32 %v1610_v1, %v1609_v4  ;;  %vm1621_vm3 = vcmp.lt.s32.totalorder %v4703_v59, 4  ;;  %v902_v0 = vand.u32 2147483647, %v901_v47  ;;  %v1700_v51 = vadd.s32 1, %v3369_v34  ;;  %v6026_v47 = vld [vmem:[#allocation8_spill] sm:$0xff] }
 0x150   : > { %v1617_v10 = vor.u32 %v1616_v61, %v1615_v46  ;;  %v1627_v15 = vsel %vm1621_vm3, %v1614_v63, 920167782  ;;  %v4737_v13 = vsel %vm674_vm0, nan, %v684_v43  ;;  %v4739_v31 = vand.u32 3, %v811_v32 }
 0x151   : > { %vm3344_vm4 = vcmp.lt.s32.totalorder %v3343_v11, 0  ;;  %v3346_v37 = vmin.u32 %v1096_v53, %v4695_v6  ;;  %v904_v19 = vcvt.s32.f32 %v897_v35  ;;  %v909_v54 = vsel %vm824_vm1, %v908_v23, %v4434_v33 }
 0x152   : > { %vm1618_vm5 = vcmp.lt.s32.totalorder %v4703_v59, 1  ;;  %vm1620_vm6 = vcmp.lt.s32.totalorder %v4703_v59, 3  ;;  %v4749_v57 = vmul.f32 %v4031_v21, %v6026_v47  ;;  %v1594_v44 = vor.u32 8388608, %v1593_v24 }
 0x153   : > { %v1626_v32 = vsel %vm1618_vm5, %v4726_v2, %v4728_v60  ;;  %v1628_v43 = vsel %vm1620_vm6, %v4730_v48, %v1627_v15  ;;  %v905_v36 = vmul.f32 %v904_v19, %v902_v0  ;;  %v4758_v33 = vsel %vm3344_vm4, 0, %v3343_v11 }
 0x154   : > { %v1631_v23 = vsel %vm1621_vm3, %v1617_v10, 1326507024  ;;  %vm1701_vm7 = vcmp.gt.s32.totalorder %v1700_v51, 0  ;;  %v1098_v1 = vclz %v3346_v37  ;;  %vm1619_vm8 = vcmp.lt.s32.totalorder %v4703_v59, 2 }
 0x155   : > { %v5964_v61 = vand.u32 2147483647, %v4653_v45  ;;  %v1702_v34 = vsel %vm1701_vm7, %v1700_v51, 0  ;;  %3553 = vsinq.f32 %v806_v7  ;;  %v4766_v16 = vsel %vm4715_vm2, 0, %v909_v54 }
 0x156   : > { %v1629_v53 = vsel %vm1619_vm8, %v1626_v32, %v1628_v43  ;;  %v1704_v11 = vand.u32 31, %v1702_v34  ;;  %v1630_v17 = vsel %vm1618_vm5, %v4728_v60, %v4730_v48  ;;  %v1632_v58 = vsel %vm1620_vm6, %v1614_v63, %v1631_v23 }
 0x157   : > { %v4776_v4 = vshll.u32 %v1594_v44, 8  ;;  %v1797_v7 = vand.u32 2139095040, %v4749_v57  ;;  %v906_v35 = vxor.u32 2147483648, %v905_v36  ;;  %v982_v24 = vadd.s32 %v4442_v14, %v4458_v50 }
 0x158   : > { %v1002_v46 = vsub.s32 4294967266, %v4758_v33  ;;  %v4782_v0 = vsub.s32 32, %v1704_v11  ;;  %v3347_v10 = vadd.s32 4294967294, %v1098_v1  ;;  %v1697_v63 = vand.u32 8388607, %v5964_v61 }
 0x159   : > { %v4785_v15 = vmul.u32.u64.low %v4776_v4, %v1629_v53  ;;  %v4786_v51 = vmul.u32.u64.high %v4776_v4, %v1629_v53, %v4785_v15  ;;  %v1633_v37 = vsel %vm1619_vm8, %v1630_v17, %v1632_v58  ;;  %v4793_v19 = vshrl.u32 %v1702_v34, 5 }
 0x15a   : > { %v1708_v14 = vshrl.u32 %v5991_v8, %v4782_v0  ;;  %v1711_v50 = vshrl.u32 %v5993_v62, %v4782_v0  ;;  %v4799_v54 = vpop.eup %3551  ;;  %v1714_v47 = vshrl.u32 %v6021_v30, %v4782_v0  ;;  %v1716_v44 = vshll.u32 %v6021_v30, %v1704_v11 }
 0x15b   : > { %6027 = vst [vmem:[#allocation8_spill] sm:$0xff] %v4785_v15  ;;  %v1717_v32 = vshrl.u32 %v6020_v40, %v4782_v0  ;;  %v1798_v43 = vshrl.u32 %v1797_v7, 23  ;;  %v1707_v23 = vshll.u32 %v6007_v22, %v1704_v11  ;;  %v1710_v1 = vshll.u32 %v5991_v8, %v1704_v11 }
 0x15c   : > { %v1713_v34 = vshll.u32 %v5993_v62, %v1704_v11  ;;  %v1720_v53 = vshrl.u32 %v6022_v56, %v4782_v0  ;;  %v4812_v17 = vmul.u32.u64.low %v4776_v4, %v1633_v37  ;;  %v4813_v58 = vmul.u32.u64.high %v4776_v4, %v1633_v37, %v4812_v17 }
 0x15d   : > { %v1718_v61 = vor.u32 %v1717_v32, %v1716_v44  ;;  %v1719_v49 = vshll.u32 %v6020_v40, %v1704_v11  ;;  %v4816_v45 = vor.u32 %v1708_v14, %v1707_v23  ;;  %v4818_v18 = vor.u32 %v1711_v50, %v1710_v1  ;;  %v6029_v17 = vld [vmem:[#allocation11_spill] sm:$0xff] }
 0x15e   : > { %6028 = vst [vmem:[#allocation17_spill] sm:$0xff] %v4813_v58  ;;  %v4820_v7 = vor.u32 %v1714_v47, %v1713_v34  ;;  %vm1725_vm9 = vcmp.lt.s32.totalorder %v4793_v19, 4  ;;  %v5973_v41 = vxor.u32 2147483648, %v4799_v54  ;;  %v998_v27 = vsub.s32 32, %v4758_v33 }
 0x15f   : > { %v1731_v9 = vsel %vm1725_vm9, %v1718_v61, 920167782  ;;  %v3373_v37 = vadd.s32 4294967169, %v1798_v43  ;;  %vm928_vm10 = vcmp.lt.s32.totalorder %v6029_v17, 0  ;;  %v1003_v44 = vadd.s32 127, %v1002_v46 }
 0x160   : > { %v1012_v11 = vsub.s32 4, %v4600_v3  ;;  %vm3348_vm11 = vcmp.lt.s32.totalorder %v3347_v10, 0  ;;  %v1721_v14 = vor.u32 %v1720_v53, %v1719_v49  ;;  %v1602_v50 = vshrl.u32 %v6007_v22, %v4678_v55 }
 0x161   : > { %v1623_v47 = vsel %vm1621_vm3, %v4730_v48, 2102212464  ;;  %vm1722_vm12 = vcmp.lt.s32.totalorder %v4793_v19, 1  ;;  %vm1724_vm13 = vcmp.lt.s32.totalorder %v4793_v19, 3  ;;  %v907_v32 = vsel %vm824_vm1, %v906_v35, %v905_v36 }
 0x162   : > { %v1698_v43 = vor.u32 8388608, %v1697_v63  ;;  %v1730_v49 = vsel %vm1722_vm12, %v4816_v45, %v4818_v18  ;;  %v1732_v55 = vsel %vm1724_vm13, %v4820_v7, %v1731_v9  ;;  %v4845_v46 = vpop.eup %3553  ;;  %vm814_vm14 = vcmp.eq.s32.totalorder %v4739_v31, 0 }
 0x163   : > { %vm817_vm15 = vcmp.eq.s32.totalorder %v4739_v31, 2  ;;  %v1000_v48 = vshrl.u32 %v982_v24, %v998_v27  ;;  %v4850_v23 = vsel %vm3348_vm11, 0, %v3347_v10  ;;  %v1622_v36 = vsel %vm1618_vm5, %v1602_v50, %v4726_v2 }
 0x164   : > { %v1804_v35 = vadd.s32 1, %v3373_v37  ;;  %v6030_v63 = vand.u32 2147483647, %v6029_v17  ;;  %v1624_v9 = vsel %vm1620_vm6, %v4728_v60, %v1623_v47  ;;  %vm1723_vm1 = vcmp.lt.s32.totalorder %v4793_v19, 2 }
 0x165   : > { %v1734_v27 = vsel %vm1722_vm12, %v4818_v18, %v4820_v7  ;;  %v1735_v2 = vsel %vm1725_vm9, %v1721_v14, 1326507024  ;;  %v1004_v24 = vshll.u32 %v1003_v44, 23  ;;  %v1644_v10 = vadd.s32 1, %v4786_v51 }
 0x166   : > { %vm4857_vm0 = vcmp.le.f32.partialorder %v6030_v63, 0.7853982  ;;  %v1733_v34 = vsel %vm1723_vm1, %v1730_v49, %v1732_v55  ;;  %v1736_v53 = vsel %vm1724_vm13, %v1718_v61, %v1735_v2  ;;  %v5974_v60 = vxor.u32 2147483648, %v4845_v46 }
 0x167   : > { %v999_v37 = vshll.u32 %v4635_v26, %v4758_v33  ;;  %vm1643_vm3 = vc.u32 %v4813_v58, %v4785_v15  ;;  %v4881_v50 = vshll.u32 %v1698_v43, 8  ;;  %v1106_v44 = vsub.s32 4294967266, %v4850_v23 }
 0x168   : > { %v1625_v14 = vsel %vm1619_vm8, %v1622_v36, %v1624_v9  ;;  %v1737_v47 = vsel %vm1723_vm1, %v1734_v27, %v1736_v53  ;;  %vm1805_vm4 = vcmp.gt.s32.totalorder %v1804_v35, 0  ;;  %v910_v61 = vsel %vm4715_vm2, %v4120_v29, %v907_v32 }
 0x169   : > { %v4892_v26 = vmul.u32.u64.low %v4881_v50, %v1733_v34  ;;  %v4893_v33 = vmul.u32.u64.high %v4881_v50, %v1733_v34, %v4892_v26  ;;  %v1806_v43 = vsel %vm1805_vm4, %v1804_v35, 0  ;;  %v1001_v49 = vor.u32 %v1000_v48, %v999_v37 }
 0x16a   : > { %v1005_v55 = vor.u32 4788187, %v1004_v24  ;;  %v1013_v59 = vsel %vm928_vm10, %v1012_v11, %v4600_v3  ;;  %v1645_v36 = vsel %vm1643_vm3, %v1644_v10, %v4786_v51  ;;  %v1641_v63 = vmul.u32 %v4776_v4, %v1625_v14 }
 0x16b   : > { %v4902_v9 = vmul.u32.u64.low %v4881_v50, %v1737_v47  ;;  %v4903_v12 = vmul.u32.u64.high %v4881_v50, %v1737_v47, %v4902_v9  ;;  %v1808_v32 = vand.u32 31, %v1806_v43  ;;  %v4907_v27 = vmul.f32 %v4699_v28, %v4737_v13 }
 0x16c   : > { %v4910_v48 = vadd.s32 3, %v4766_v16  ;;  %v1107_v35 = vadd.s32 127, %v1106_v44  ;;  %3555 = vrcp.f32 %v4080_v42  ;;  %v4918_v3 = vsel %vm814_vm14, %v4799_v54, %v5974_v60  ;;  %v6033_v44 = vld [vmem:[#allocation10_spill] sm:$0xff] }
 0x16d   : > { %v4925_v28 = vsel %vm817_vm15, %v5973_v41, %v4845_v46  ;;  %3557 = vcosq.f32 %v910_v61  ;;  %v4927_v13 = vadd.s32 %v1645_v36, %v1641_v63  ;;  %v4931_v4 = vsel %vm4857_vm0, 0, %v1013_v59 }
 0x16e   : > { %3559 = vsinq.f32 %v910_v61  ;;  %v1727_v51 = vsel %vm1725_vm9, %v4820_v7, 2102212464  ;;  %v4936_v11 = vsub.s32 32, %v1808_v32  ;;  %v1006_v2 = vand.u32 2147483647, %v1005_v55 }
 0x16f   : > { %v1008_v24 = vcvt.s32.f32 %v1001_v49  ;;  %v1086_v10 = vadd.s32 %v4548_v39, %v4556_v52  ;;  %v1706_v34 = vshrl.u32 %v6007_v22, %v4782_v0  ;;  %v1102_v53 = vsub.s32 32, %v4850_v23 }
 0x170   : > { %v1108_v37 = vshll.u32 %v1107_v35, 23  ;;  %v4945_v14 = vmul.f32 %v4031_v21, %v6033_v44  ;;  %v5978_v47 = vand.u32 2147483647, %v4749_v57  ;;  %v1647_v7 = vadd.s32 536870912, %v4927_v13 }
 0x171   : > { %v1726_v61 = vsel %vm1722_vm12, %v1706_v34, %v4816_v45  ;;  %v1728_v39 = vsel %vm1724_vm13, %v4818_v18, %v1727_v51  ;;  %v1748_v52 = vadd.s32 1, %v4893_v33  ;;  %v1812_v0 = vshrl.u32 %v5991_v8, %v4936_v11 }
 0x172   : > { %v1815_v21 = vshrl.u32 %v5993_v62, %v4936_v11  ;;  %v1818_v49 = vshrl.u32 %v6021_v30, %v4936_v11  ;;  %v1821_v55 = vshrl.u32 %v6020_v40, %v4936_v11  ;;  %vm1747_vm2 = vc.u32 %v4903_v12, %v4892_v26 }
 0x173   : > { %v4966_v45 = vshrl.u32 %v1806_v43, 5  ;;  %v1820_v18 = vshll.u32 %v6021_v30, %v1808_v32  ;;  %v1824_v59 = vshrl.u32 %v6022_v56, %v4936_v11  ;;  %v1811_v36 = vshll.u32 %v6007_v22, %v1808_v32 }
 0x174   : > { %v1814_v63 = vshll.u32 %v5991_v8, %v1808_v32  ;;  %v1817_v9 = vshll.u32 %v5993_v62, %v1808_v32  ;;  %v1823_v35 = vshll.u32 %v6020_v40, %v1808_v32  ;;  %v4975_v51 = vmul.f32 %v1008_v24, %v1006_v2 }
 0x175   : > { %v1729_v34 = vsel %vm1723_vm1, %v1726_v61, %v1728_v39  ;;  %v1801_v43 = vand.u32 8388607, %v5978_v47  ;;  %v1822_v44 = vor.u32 %v1821_v55, %v1820_v18  ;;  %v4981_v41 = vor.u32 %v1812_v0, %v1811_v36 }
 0x176   : > { %v4983_v60 = vor.u32 %v1815_v21, %v1814_v63  ;;  %v4985_v15 = vor.u32 %v1818_v49, %v1817_v9  ;;  %v1825_v58 = vor.u32 %v1824_v59, %v1823_v35  ;;  %vm810_vm5 = vweird.f32 %v4080_v42 }
 0x177   : > { %v1103_v32 = vshll.u32 %v4695_v6, %v4850_v23  ;;  %v1104_v2 = vshrl.u32 %v1086_v10, %v1102_v53  ;;  %v1749_v19 = vsel %vm1747_vm2, %v1748_v52, %v4893_v33  ;;  %v1901_v24 = vand.u32 2139095040, %v4945_v14 }
 0x178   : > { %v1109_v61 = vor.u32 4788187, %v1108_v37  ;;  %v4995_v39 = vshrl.u32 %v1647_v7, 30  ;;  %v1745_v0 = vmul.u32 %v4881_v50, %v1729_v34  ;;  %vm1829_vm6 = vcmp.lt.s32.totalorder %v4966_v45, 4 }
 0x179   : > { %v4999_v21 = vpop.eup %3555  ;;  %v1802_v49 = vor.u32 8388608, %v1801_v43  ;;  %vm1826_vm7 = vcmp.lt.s32.totalorder %v4966_v45, 1  ;;  %vm1828_vm8 = vcmp.lt.s32.totalorder %v4966_v45, 3  ;;  %v1835_v6 = vsel %vm1829_vm6, %v1822_v44, 920167782 }
 0x17a   : > { %v5005_v23 = vpop.eup %3557  ;;  %v5007_v33 = vadd.s32 %v1749_v19, %v1745_v0  ;;  %v1834_v50 = vsel %vm1826_vm7, %v4981_v41, %v4983_v60  ;;  %v1836_v10 = vsel %vm1828_vm8, %v4985_v15, %v1835_v6  ;;  %v1839_v53 = vsel %vm1829_vm6, %v1825_v58, 1326507024 }
 0x17b   : > { %v5018_v37 = vpop.eup %3559  ;;  %v1105_v7 = vor.u32 %v1104_v2, %v1103_v32  ;;  %v1838_v52 = vsel %vm1826_vm7, %v4983_v60, %v4985_v15  ;;  %v1840_v55 = vsel %vm1828_vm8, %v1822_v44, %v1839_v53  ;;  %v1902_v18 = vshrl.u32 %v1901_v24, 23 }
 0x17c   : > { %v5028_v59 = vmul.f32 %v4655_v38, %v4907_v27  ;;  %vm813_vm9 = vcmp.lt.s32.totalorder %v4739_v31, 2  ;;  %v1649_v58 = vshll.u32 %v4995_v39, 30  ;;  %vm1827_vm11 = vcmp.lt.s32.totalorder %v4966_v45, 2 }
 0x17d   : > { %v820_v36 = vsel %vm813_vm9, %v4918_v3, %v4925_v28  ;;  %v916_v63 = vand.u32 3, %v4910_v48  ;;  %v1110_v9 = vand.u32 2147483647, %v1109_v61  ;;  %v1837_v35 = vsel %vm1827_vm11, %v1834_v50, %v1836_v10 }
 0x17e   : > { %v1019_v34 = vadd.s32 3, %v4931_v4  ;;  %v1751_v38 = vadd.s32 536870912, %v5007_v33  ;;  %v1841_v31 = vsel %vm1827_vm11, %v1838_v52, %v1840_v55  ;;  %v5042_v27 = vshll.u32 %v1802_v49, 8 }
 0x17f   : > { %v1010_v43 = vxor.u32 2147483648, %v4975_v51  ;;  %v1112_v44 = vcvt.s32.f32 %v1105_v7  ;;  %v5046_v3 = vand.u32 3, %v4667_v20  ;;  %v3377_v48 = vadd.s32 4294967169, %v1902_v18 }
 0x180   : > { %v821_v28 = vsel %vm810_vm5, nan, %v820_v36  ;;  %vm1032_vm12 = vcmp.lt.s32.totalorder %v4262_v5, 0  ;;  %v5052_v32 = vsub.s32 %v4927_v13, %v1649_v58  ;;  %vm917_vm13 = vcmp.lt.s32.totalorder %v916_v63, 2 }
 0x181   : > { %v5055_v2 = vmul.u32.u64.low %v5042_v27, %v1837_v35  ;;  %v5056_v19 = vmul.u32.u64.high %v5042_v27, %v1837_v35, %v5055_v2  ;;  %v1113_v24 = vmul.f32 %v1112_v44, %v1110_v9  ;;  %v1908_v20 = vadd.s32 1, %v3377_v48 }
 0x182   : > { %v5060_v61 = vmul.u32.u64.low %v5042_v27, %v1841_v31  ;;  %v5061_v0 = vmul.u32.u64.high %v5042_v27, %v1841_v31, %v5060_v61  ;;  %vm918_vm14 = vcmp.eq.s32.totalorder %v916_v63, 0  ;;  %vm921_vm15 = vcmp.eq.s32.totalorder %v916_v63, 2 }
 0x183   : > { %v5063_v49 = vand.u32 3, %v1019_v34  ;;  %v5065_v6 = vshrl.u32 %v1751_v38, 30  ;;  %v5980_v13 = vxor.u32 2147483648, %v5018_v37  ;;  %v5979_v50 = vxor.u32 2147483648, %v5005_v23 }
 0x184   : > { %v1011_v10 = vsel %vm928_vm10, %v1010_v43, %v4975_v51  ;;  %v6034_v53 = vand.u32 2147483647, %v4262_v5  ;;  %3561 = vrcp.f32 %v4120_v29  ;;  %v5081_v52 = vmul.f32 %v4999_v21, %v821_v28 }
 0x185   : > { %3563 = vrcp.f32 %v6029_v17  ;;  %v1652_v55 = vsub.s32 0, %v5052_v32  ;;  %vm1909_vm3 = vcmp.gt.s32.totalorder %v1908_v20, 0  ;;  %v1114_v18 = vxor.u32 2147483648, %v1113_v24 }
 0x186   : > { %vm5074_vm1 = vcmp.le.f32.partialorder %v6034_v53, 0.7853982  ;;  %vm1241_vm4 = vcmp.eq.s32.totalorder %v5046_v3, 0  ;;  %v1831_v51 = vsel %vm1829_vm6, %v4985_v15, 2102212464  ;;  %v1910_v58 = vsel %vm1909_vm3, %v1908_v20, 0 }
 0x187   : > { %v1014_v36 = vsel %vm4857_vm0, %v6029_v17, %v1011_v10  ;;  %v1753_v9 = vshll.u32 %v5065_v6, 30  ;;  %v1810_v35 = vshrl.u32 %v6007_v22, %v4936_v11  ;;  %v1912_v34 = vand.u32 31, %v1910_v58 }
 0x188   : > { %v920_v38 = vsel %vm918_vm14, %v5005_v23, %v5980_v13  ;;  %v923_v15 = vsel %vm921_vm15, %v5979_v50, %v5018_v37  ;;  %v1116_v31 = vsub.s32 4, %v4660_v25  ;;  %v6037_v1 = vxor.u32 2147483648, %v4845_v46 }
 0x189   : > { %v3366_v11 = vmin.u32 %v1652_v55, %v5052_v32  ;;  %v1830_v44 = vsel %vm1826_vm7, %v1810_v35, %v4981_v41  ;;  %v1832_v48 = vsel %vm1828_vm8, %v4983_v60, %v1831_v51  ;;  %v1852_v28 = vadd.s32 1, %v5056_v19 }
 0x18a   : > { %v5106_v43 = vsel %vm1241_vm4, %v4799_v54, %v6037_v1  ;;  %vm914_vm10 = vweird.f32 %v4120_v29  ;;  %3565 = vcosq.f32 %v1014_v36  ;;  %v1115_v61 = vsel %vm1032_vm12, %v1114_v18, %v1113_v24 }
 0x18b   : > { %vm1851_vm0 = vc.u32 %v5061_v0, %v5055_v2  ;;  %v1913_v20 = vsub.s32 32, %v1912_v34  ;;  %3567 = vsinq.f32 %v1014_v36  ;;  %vm1244_vm2 = vcmp.eq.s32.totalorder %v5046_v3, 2 }
 0x18c   : > { %v5123_v41 = vsub.s32 %v5007_v33, %v1753_v9  ;;  %v5977_v60 = vand.u32 2147483647, %v4945_v14  ;;  %v924_v10 = vsel %vm917_vm13, %v920_v38, %v923_v15  ;;  %v6038_v53 = vxor.u32 2147483648, %v4799_v54 }
 0x18d   : > { %v5133_v24 = vand.u32 3, %v4766_v16  ;;  %v1833_v18 = vsel %vm1827_vm11, %v1830_v44, %v1832_v48  ;;  %v1117_v33 = vsel %vm1032_vm12, %v1116_v31, %v4660_v25  ;;  %v1118_v63 = vsel %vm5074_vm1, %v4262_v5, %v1115_v61 }
 0x18e   : > { %v5130_v55 = vsel %vm1244_vm2, %v6038_v53, %v4845_v46  ;;  %v1654_v51 = vclz %v3366_v11  ;;  %v1853_v36 = vsel %vm1851_vm0, %v1852_v28, %v5056_v19  ;;  %v1916_v54 = vshrl.u32 %v5991_v8, %v1913_v20 }
 0x18f   : > { %v1919_v46 = vshrl.u32 %v5993_v62, %v1913_v20  ;;  %v1922_v16 = vshrl.u32 %v6021_v30, %v1913_v20  ;;  %v1925_v45 = vshrl.u32 %v6020_v40, %v1913_v20  ;;  %v1756_v9 = vsub.s32 0, %v5123_v41 }
 0x190   : > { %v1849_v35 = vmul.u32 %v5042_v27, %v1833_v18  ;;  %v1905_v25 = vand.u32 8388607, %v5977_v60  ;;  %v1915_v38 = vshll.u32 %v6007_v22, %v1912_v34  ;;  %v1918_v15 = vshll.u32 %v5991_v8, %v1912_v34 }
 0x191   : > { %v1921_v19 = vshll.u32 %v5993_v62, %v1912_v34  ;;  %v1924_v31 = vshll.u32 %v6021_v30, %v1912_v34  ;;  %v1928_v1 = vshrl.u32 %v6022_v56, %v1913_v20  ;;  %v5157_v11 = vpop.eup %3561  ;;  %v5160_v44 = vand.u32 3, %v4931_v4 }
 0x192   : > { %v5162_v48 = vadd.s32 %v1853_v36, %v1849_v35  ;;  %v1911_v27 = vshrl.u32 %v1910_v58, 5  ;;  %v1927_v28 = vshll.u32 %v6020_v40, %v1912_v34  ;;  %v5165_v61 = vpop.eup %3563  ;;  %v1917_v53 = vor.u32 %v1916_v54, %v1915_v38 }
 0x193   : > { %v1920_v18 = vor.u32 %v1919_v46, %v1918_v15  ;;  %v1923_v60 = vor.u32 %v1922_v16, %v1921_v19  ;;  %v1926_v47 = vor.u32 %v1925_v45, %v1924_v31  ;;  %v925_v50 = vsel %vm914_vm10, nan, %v924_v10 }
 0x194   : > { %v5171_v13 = vsel %vm5074_vm1, 0, %v1117_v33  ;;  %3569 = vcosq.f32 %v1118_v63  ;;  %vm1240_vm6 = vcmp.lt.s32.totalorder %v5046_v3, 2  ;;  %vm1344_vm7 = vcmp.eq.s32.totalorder %v5133_v24, 0 }
 0x195   : > { %v1929_v4 = vor.u32 %v1928_v1, %v1927_v28  ;;  %3571 = vsinq.f32 %v1118_v63  ;;  %v3367_v58 = vadd.s32 4294967294, %v1654_v51  ;;  %v3370_v34 = vmin.u32 %v1756_v9, %v5123_v41 }
 0x196   : > { %v1906_v36 = vor.u32 8388608, %v1905_v25  ;;  %v1855_v54 = vadd.s32 536870912, %v5162_v48  ;;  %vm1930_vm8 = vcmp.lt.s32.totalorder %v1911_v27, 1  ;;  %vm1932_vm9 = vcmp.lt.s32.totalorder %v1911_v27, 3 }
 0x197   : > { %vm1933_vm11 = vcmp.lt.s32.totalorder %v1911_v27, 4  ;;  %vm1022_vm12 = vcmp.eq.s32.totalorder %v5063_v49, 0  ;;  %vm1025_vm13 = vcmp.eq.s32.totalorder %v5063_v49, 2  ;;  %v1938_v10 = vsel %vm1930_vm8, %v1917_v53, %v1920_v18  ;;  %v3566_v63 = vpop.eup %3565 }
 0x198   : > { %v1935_v7 = vsel %vm1933_vm11, %v1923_v60, 2102212464  ;;  %v1939_v33 = vsel %vm1933_vm11, %v1926_v47, 920167782  ;;  %v1942_v46 = vsel %vm1930_vm8, %v1920_v18, %v1923_v60  ;;  %v1914_v51 = vshrl.u32 %v6007_v22, %v1913_v20  ;;  %v3568_v9 = vpop.eup %3567 }
 0x199   : > { %vm1931_vm14 = vcmp.lt.s32.totalorder %v1911_v27, 2  ;;  %v1940_v16 = vsel %vm1932_vm9, %v1923_v60, %v1939_v33  ;;  %v1943_v45 = vsel %vm1933_vm11, %v1929_v4, 1326507024  ;;  %v1758_v35 = vclz %v3370_v34 }
 0x19a   : > { %v1941_v25 = vsel %vm1931_vm14, %v1938_v10, %v1940_v16  ;;  %v1944_v38 = vsel %vm1932_vm9, %v1926_v47, %v1943_v45  ;;  %v1946_v15 = vshll.u32 %v1906_v36, 8  ;;  %vm1021_vm15 = vcmp.lt.s32.totalorder %v5063_v49, 2 }
 0x19b   : > { %v5186_v19 = vshrl.u32 %v1855_v54, 30  ;;  %v1934_v31 = vsel %vm1930_vm8, %v1914_v51, %v1917_v53  ;;  %v1936_v1 = vsel %vm1932_vm9, %v1920_v18, %v1935_v7  ;;  %v1945_v20 = vsel %vm1931_vm14, %v1942_v46, %v1944_v38 }
 0x19c   : > { %v5191_v28 = vmul.u32.u64.low %v1946_v15, %v1945_v20  ;;  %v5192_v60 = vmul.u32.u64.high %v1946_v15, %v1945_v20, %v5191_v28  ;;  %v5194_v4 = vmul.u32.u64.low %v1946_v15, %v1941_v25  ;;  %v5195_v34 = vmul.u32.u64.high %v1946_v15, %v1941_v25, %v5194_v4 }
 0x19d   : > { %v1023_v10 = vxor.u32 2147483648, %v3568_v9  ;;  %v1026_v47 = vxor.u32 2147483648, %v3566_v63  ;;  %vm1347_vm1 = vcmp.eq.s32.totalorder %v5133_v24, 2  ;;  %vm3368_vm3 = vcmp.lt.s32.totalorder %v3367_v58, 0 }
 0x19e   : > { %vm1018_vm4 = vweird.f32 %v6029_v17  ;;  %v1247_v53 = vsel %vm1240_vm6, %v5106_v43, %v5130_v55  ;;  %v6039_v18 = vxor.u32 2147483648, %v5018_v37  ;;  %v6040_v54 = vxor.u32 2147483648, %v5005_v23 }
 0x19f   : > { %v1937_v33 = vsel %vm1931_vm14, %v1934_v31, %v1936_v1  ;;  %v1123_v46 = vadd.s32 3, %v5171_v13  ;;  %v1143_v51 = vmul.f32 %v5157_v11, %v925_v50  ;;  %vm1343_vm0 = vcmp.lt.s32.totalorder %v5133_v24, 2 }
 0x1a0   : > { %v1346_v36 = vsel %vm1344_vm7, %v5005_v23, %v6039_v18  ;;  %v1349_v7 = vsel %vm1347_vm1, %v6040_v54, %v5018_v37  ;;  %v3371_v3 = vadd.s32 4294967294, %v1758_v35  ;;  %v5216_v43 = vsel %vm3368_vm3, 0, %v3367_v58 }
 0x1a1   : > { %v1857_v55 = vshll.u32 %v5186_v19, 30  ;;  %vm1955_vm2 = vc.u32 %v5192_v60, %v5194_v4  ;;  %v1956_v16 = vadd.s32 1, %v5195_v34  ;;  %v1024_v23 = vsel %vm1022_vm12, %v3566_v63, %v1023_v10  ;;  %v3570_v45 = vpop.eup %3569 }
 0x1a2   : > { %v1027_v37 = vsel %vm1025_vm13, %v1026_v47, %v3568_v9  ;;  %v1350_v27 = vsel %vm1343_vm0, %v1346_v36, %v1349_v7  ;;  %v1953_v50 = vmul.u32 %v1946_v15, %v1937_v33  ;;  %3573 = vrcp.f32 %v4262_v5  ;;  %v3572_v35 = vpop.eup %3571 }
 0x1a3   : > { %v1248_v24 = vsel %vm810_vm5, nan, %v1247_v53  ;;  %vm1450_vm6 = vcmp.eq.s32.totalorder %v5160_v44, 2  ;;  %v1957_v58 = vsel %vm1955_vm2, %v1956_v16, %v5195_v34  ;;  %v1662_v38 = vsub.s32 4294967266, %v5216_v43 }
 0x1a4   : > { %v1558_v25 = vsub.f32 %v5081_v52, %v1248_v24  ;;  %vm3372_vm7 = vcmp.lt.s32.totalorder %v3371_v3, 0  ;;  %v1958_v31 = vadd.s32 %v1957_v58, %v1953_v50  ;;  %v1028_v15 = vsel %vm1021_vm15, %v1024_v23, %v1027_v37  ;;  %v6042_v37 = vld [vmem:[#allocation17_spill] sm:$0xff] }
 0x1a5   : > { %v1124_v1 = vand.u32 3, %v1123_v46  ;;  %v1351_v42 = vsel %vm914_vm10, nan, %v1350_v27  ;;  %v5238_v20 = vsub.s32 %v5162_v48, %v1857_v55  ;;  %vm1447_vm5 = vcmp.eq.s32.totalorder %v5160_v44, 0  ;;  %v5260_v46 = vld [vmem:[%s226_s28] sm:$0xf]  ;;  %v6043_v27 = vld [vmem:[#allocation8_spill] sm:$0xff] }
 0x1a6   : > { %v1452_v28 = vsel %vm1450_vm6, %v1026_v47, %v3568_v9  ;;  %v1559_v34 = vsub.f32 %v1143_v51, %v1351_v42  ;;  %v1959_v52 = vadd.s32 536870912, %v1958_v31  ;;  %v1127_v53 = vxor.u32 2147483648, %v3572_v35 }
 0x1a7   : > { %v1130_v18 = vxor.u32 2147483648, %v3570_v45  ;;  %v1449_v36 = vsel %vm1447_vm5, %v3566_v63, %v1023_v10  ;;  %v5241_v54 = vsel %vm3372_vm7, 0, %v3371_v3  ;;  %v1029_v29 = vsel %vm1018_vm4, nan, %v1028_v15  ;;  %v6041_v63 = vld [vmem:[#allocation12_spill] sm:$0xff] }
 0x1a8   : > { %vm1122_vm10 = vweird.f32 %v4262_v5  ;;  %vm1446_vm8 = vcmp.lt.s32.totalorder %v5160_v44, 2  ;;  %v1548_v49 = vand.u32 3, %v5171_v13  ;;  %v1663_v48 = vadd.s32 127, %v1662_v38 }
 0x1a9   : > { %vm1126_vm9 = vcmp.eq.s32.totalorder %v1124_v1, 0  ;;  %v5253_v9 = vmul.f32 %v4999_v21, %v1558_v25  ;;  %vm1588_vm11 = vcmp.lt.s32.totalorder %v6041_v63, 0  ;;  %v1860_v10 = vsub.s32 0, %v5238_v20 }
 0x1aa   : > { %vm1129_vm12 = vcmp.eq.s32.totalorder %v1124_v1, 2  ;;  %v1453_v47 = vsel %vm1446_vm8, %v1449_v36, %v1452_v28  ;;  %v1766_v7 = vsub.s32 4294967266, %v5241_v54  ;;  %v5258_v33 = vshrl.u32 %v1959_v52, 30 }
 0x1ab   : > { %v1128_v44 = vsel %vm1126_vm9, %v3570_v45, %v1127_v53  ;;  %v1131_v13 = vsel %vm1129_vm12, %v1130_v18, %v3572_v35  ;;  %v1144_v51 = vmul.f32 %v5165_v61, %v1029_v29  ;;  %v5264_v21 = vmul.f32 %v5157_v11, %v1559_v34 }
 0x1ac   : > { %vm1553_vm13 = vcmp.eq.s32.totalorder %v1548_v49, 2  ;;  %v1658_v3 = vsub.s32 32, %v5216_v43  ;;  %v1664_v55 = vshll.u32 %v1663_v48, 23  ;;  %v1672_v16 = vsub.s32 4, %v4995_v39 }
 0x1ad   : > { %vm1125_vm14 = vcmp.lt.s32.totalorder %v1124_v1, 2  ;;  %v1454_v23 = vsel %vm1018_vm4, nan, %v1453_v47  ;;  %v1642_v50 = vadd.s32 %v6043_v27, %v6042_v37  ;;  %v3374_v24 = vmin.u32 %v1860_v10, %v5238_v20 }
 0x1ae   : > { %v1132_v58 = vsel %vm1125_vm14, %v1128_v44, %v1131_v13  ;;  %v1767_v11 = vadd.s32 127, %v1766_v7  ;;  %v1961_v25 = vshll.u32 %v5258_v33, 30  ;;  %v2458_v38 = vand.u32 2139095040, %v5260_v46 }
 0x1af   : > { %vm1550_vm15 = vcmp.eq.s32.totalorder %v1548_v49, 0  ;;  %v1555_v15 = vsel %vm1553_vm13, %v1130_v18, %v3572_v35  ;;  %v1560_v42 = vsub.f32 %v1144_v51, %v1454_v23  ;;  %v6044_v28 = vand.u32 2147483647, %v6041_v63  ;;  %v3574_v17 = vpop.eup %3573 }
 0x1b0   : > { %v1552_v34 = vsel %vm1550_vm15, %v3570_v45, %v1127_v53  ;;  %v1660_v52 = vshrl.u32 %v1642_v50, %v1658_v3  ;;  %v1665_v36 = vor.u32 4788187, %v1664_v55  ;;  %v1673_v29 = vsel %vm1588_vm11, %v1672_v16, %v4995_v39  ;;  %v6047_v16 = vld [vmem:[#allocation14_spill] sm:$0xff] }
 0x1b1   : > { %vm5278_vm1 = vcmp.le.f32.partialorder %v6044_v28, 0.7853982  ;;  %v1133_v35 = vsel %vm1122_vm10, nan, %v1132_v58  ;;  %v1762_v18 = vsub.s32 32, %v5241_v54  ;;  %v1862_v48 = vclz %v3374_v24  ;;  %v6049_v24 = vld [vmem:[#allocation16_spill] sm:$0xff] }
 0x1b2   : > { %v2459_v10 = vshrl.u32 %v2458_v38, 23  ;;  %vm1549_vm3 = vcmp.lt.s32.totalorder %v1548_v49, 2  ;;  %v1659_v47 = vshll.u32 %v5052_v32, %v5216_v43  ;;  %v1768_v7 = vshll.u32 %v1767_v11, 23  ;;  %v5323_v38 = vpop.permute.xlu0 %1568 }
 0x1b3   : > { %v5294_v44 = vsub.s32 %v1958_v31, %v1961_v25  ;;  %v1556_v45 = vsel %vm1549_vm3, %v1552_v34, %v1555_v15  ;;  %v1564_v53 = vmul.f32 %v5165_v61, %v1560_v42  ;;  %v1746_v39 = vadd.s32 %v4892_v26, %v4903_v12  ;;  %v6048_v12 = vld [vmem:[#allocation15_spill] sm:$0xff] }
 0x1b4   : > { %v3397_v13 = vadd.s32 4294967169, %v2459_v10  ;;  %v1145_v51 = vmul.f32 %v3574_v17, %v1133_v35  ;;  %v1661_v3 = vor.u32 %v1660_v52, %v1659_v47  ;;  %v1666_v55 = vand.u32 2147483647, %v1665_v36 }
 0x1b5   : > { %v5301_v49 = vsel %vm5278_vm1, 0, %v1673_v29  ;;  %v1764_v32 = vshrl.u32 %v1746_v39, %v1762_v18  ;;  %v3375_v43 = vadd.s32 4294967294, %v1862_v48  ;;  %v2891_v23 = vmul.f32 0.2820948, %v6047_v16  ;;  %v5332_v29 = vld [vmem:[%s231_s8] sm:$0xf] }
 0x1b6   : > { %v2465_v31 = vadd.s32 1, %v3397_v13  ;;  %v1557_v61 = vsel %vm1122_vm10, nan, %v1556_v45  ;;  %v1769_v37 = vor.u32 4788187, %v1768_v7  ;;  %v1964_v26 = vsub.s32 0, %v5294_v44 }
 0x1b7   : > { %v2892_v27 = vmul.f32 0.2820948, %v6048_v12  ;;  %v1763_v50 = vshll.u32 %v5123_v41, %v5241_v54  ;;  %v2893_v58 = vmul.f32 0.2820948, %v6049_v24  ;;  %v2894_v11 = vmul.f32 0.2820948, %v5028_v59 }
 0x1b8   : > { %vm2466_vm4 = vcmp.gt.s32.totalorder %v2465_v31, 0  ;;  %2895 = vst [vmem:[%s5313_s5] sm:$0x3f] %v2891_v23  ;;  %v1668_v5 = vcvt.s32.f32 %v1661_v3  ;;  %v1679_v25 = vadd.s32 3, %v5301_v49  ;;  %v5981_v41 = vand.u32 2147483647, %v5260_v46 }
 0x1b9   : > { %v2467_v54 = vsel %vm2466_vm4, %v2465_v31, 0  ;;  %2896 = vst [vmem:[%s5313_s5 + $0x8] sm:$0x3f] %v2892_v27  ;;  %v1561_v15 = vsub.f32 %v1145_v51, %v1557_v61  ;;  %v1765_v42 = vor.u32 %v1764_v32, %v1763_v50  ;;  %vm3376_vm0 = vcmp.lt.s32.totalorder %v3375_v43, 0  ;;  %2897 = vst [vmem:[%s5313_s5 + $0x10] sm:$0x3f] %v2893_v58 }
 0x1ba   : > { %v2469_v28 = vand.u32 31, %v2467_v54  ;;  %2898 = vst [vmem:[%s5313_s5 + $0x18] sm:$0x3f] %v2894_v11  ;;  %v5329_v34 = vmul.f32 %v5323_v38, %v5253_v9  ;;  %v1669_v52 = vmul.f32 %v1668_v5, %v1666_v55  ;;  %v3378_v36 = vmin.u32 %v1964_v26, %v5294_v44 }
 0x1bb   : > { %v5336_v35 = vmul.f32 %v5323_v38, %v5264_v21  ;;  %v5339_v18 = vmul.f32 %v5323_v38, %v1564_v53  ;;  %v1770_v48 = vand.u32 2147483647, %v1769_v37  ;;  %v5341_v47 = vand.u32 3, %v1679_v25 }
 0x1bc   : > { %v2470_v10 = vsub.s32 32, %v2469_v28  ;;  %v5343_v7 = vsel %vm3376_vm0, 0, %v3375_v43  ;;  %v2462_v9 = vand.u32 8388607, %v5981_v41  ;;  %v2472_v45 = vshll.u32 %v6007_v22, %v2469_v28 }
 0x1bd   : > { %v5348_v39 = vmul.f32 %v3574_v17, %v1561_v15  ;;  %v1772_v13 = vcvt.s32.f32 %v1765_v42  ;;  %v2475_v51 = vshll.u32 %v5991_v8, %v2469_v28  ;;  %v1670_v53 = vxor.u32 2147483648, %v1669_v52 }
 0x1be   : > { %v2473_v21 = vshrl.u32 %v5991_v8, %v2470_v10  ;;  %v1966_v55 = vclz %v3378_v36  ;;  %v2670_v32 = vand.u32 2139095040, %v5332_v29  ;;  %v1870_v31 = vsub.s32 4294967266, %v5343_v7  ;;  %v6050_v36 = vld [vmem:[#allocation13_spill] sm:$0xff] }
 0x1bf   : > { %v1773_v43 = vmul.f32 %v1772_v13, %v1770_v48  ;;  %v2468_v23 = vshrl.u32 %v2467_v54, 5  ;;  %v2476_v61 = vshrl.u32 %v5993_v62, %v2470_v10  ;;  %v2463_v37 = vor.u32 8388608, %v2462_v9 }
 0x1c0   : > { %v2474_v17 = vor.u32 %v2473_v21, %v2472_v45  ;;  %v2478_v26 = vshll.u32 %v5993_v62, %v2469_v28  ;;  %v2479_v27 = vshrl.u32 %v6021_v30, %v2470_v10  ;;  %v2481_v58 = vshll.u32 %v6021_v30, %v2469_v28 }
 0x1c1   : > { %v2477_v50 = vor.u32 %v2476_v61, %v2475_v51  ;;  %v2482_v11 = vshrl.u32 %v6020_v40, %v2470_v10  ;;  %v2484_v5 = vshll.u32 %v6020_v40, %v2469_v28  ;;  %v3379_v25 = vadd.s32 4294967294, %v1966_v55 }
 0x1c2   : > { %v2480_v15 = vor.u32 %v2479_v27, %v2478_v26  ;;  %v2485_v42 = vshrl.u32 %v6022_v56, %v2470_v10  ;;  %v2671_v54 = vshrl.u32 %v2670_v32, 23  ;;  %vm1692_vm2 = vcmp.lt.s32.totalorder %v6050_v36, 0 }
 0x1c3   : > { %v2471_v48 = vshrl.u32 %v6007_v22, %v2470_v10  ;;  %v2483_v9 = vor.u32 %v2482_v11, %v2481_v58  ;;  %vm2487_vm6 = vcmp.lt.s32.totalorder %v2468_v23, 1  ;;  %vm2489_vm7 = vcmp.lt.s32.totalorder %v2468_v23, 3 }
 0x1c4   : > { %v1866_v45 = vsub.s32 32, %v5343_v7  ;;  %v2486_v13 = vor.u32 %v2485_v42, %v2484_v5  ;;  %vm2488_vm5 = vcmp.lt.s32.totalorder %v2468_v23, 2  ;;  %vm2490_vm10 = vcmp.lt.s32.totalorder %v2468_v23, 4 }
 0x1c5   : > { %v2492_v21 = vsel %vm2490_vm10, %v2480_v15, 2102212464  ;;  %v2495_v28 = vsel %vm2487_vm6, %v2474_v17, %v2477_v50  ;;  %v2496_v51 = vsel %vm2490_vm10, %v2483_v9, 920167782  ;;  %v2503_v55 = vshll.u32 %v2463_v37, 8 }
 0x1c6   : > { %v6051_v32 = vand.u32 2147483647, %v6050_v36  ;;  %v1871_v10 = vadd.s32 127, %v1870_v31  ;;  %vm3380_vm9 = vcmp.lt.s32.totalorder %v3379_v25, 0  ;;  %v2497_v26 = vsel %vm2489_vm7, %v2480_v15, %v2496_v51 }
 0x1c7   : > { %v3406_v27 = vadd.s32 4294967169, %v2671_v54  ;;  %v2491_v58 = vsel %vm2487_vm6, %v2471_v48, %v2474_v17  ;;  %v2493_v11 = vsel %vm2489_vm7, %v2477_v50, %v2492_v21  ;;  %v2498_v5 = vsel %vm2488_vm5, %v2495_v28, %v2497_v26 }
 0x1c8   : > { %vm5370_vm8 = vcmp.le.f32.partialorder %v6051_v32, 0.7853982  ;;  %v2499_v42 = vsel %vm2487_vm6, %v2477_v50, %v2480_v15  ;;  %v1671_v37 = vsel %vm1588_vm11, %v1670_v53, %v1669_v52  ;;  %v1774_v32 = vxor.u32 2147483648, %v1773_v43 }
 0x1c9   : > { %v1850_v41 = vadd.s32 %v5055_v2, %v5061_v0  ;;  %v2500_v31 = vsel %vm2490_vm10, %v2486_v13, 1326507024  ;;  %v1969_v3 = vsel %vm3380_vm9, 0, %v3379_v25  ;;  %v1872_v48 = vshll.u32 %v1871_v10, 23 }
 0x1ca   : > { %v2501_v54 = vsel %vm2489_vm7, %v2483_v9, %v2500_v31  ;;  %v5385_v51 = vmul.u32.u64.low %v2503_v55, %v2498_v5  ;;  %v5386_v17 = vmul.u32.u64.high %v2503_v55, %v2498_v5, %v5385_v51  ;;  %v2494_v21 = vsel %vm2488_vm5, %v2491_v58, %v2493_v11 }
 0x1cb   : > { %v2502_v50 = vsel %vm2488_vm5, %v2499_v42, %v2501_v54  ;;  %v2677_v15 = vadd.s32 1, %v3406_v27  ;;  %v1674_v52 = vsel %vm5278_vm1, %v6041_v63, %v1671_v37  ;;  %v1868_v2 = vshrl.u32 %v1850_v41, %v1866_v45 }
 0x1cc   : > { %v5394_v0 = vmul.u32.u64.low %v2503_v55, %v2502_v50  ;;  %v5395_v53 = vmul.u32.u64.high %v2503_v55, %v2502_v50, %v5394_v0  ;;  %v1775_v25 = vsel %vm1692_vm2, %v1774_v32, %v1773_v43  ;;  %v1867_v9 = vshll.u32 %v5238_v20, %v5343_v7 }
 0x1cd   : > { %v1974_v13 = vsub.s32 4294967266, %v1969_v3  ;;  %vm2678_vm11 = vcmp.gt.s32.totalorder %v2677_v15, 0  ;;  %v2510_v28 = vmul.u32 %v2503_v55, %v2494_v21  ;;  %v2513_v23 = vadd.s32 1, %v5386_v17 }
 0x1ce   : > { %v2667_v10 = vand.u32 2147483647, %v5332_v29  ;;  %v2679_v26 = vsel %vm2678_vm11, %v2677_v15, 0  ;;  %3575 = vcosq.f32 %v1674_v52  ;;  %v6054_v1 = vsub.s32 4, %v5065_v6 }
 0x1cf   : > { %v1873_v45 = vor.u32 4788187, %v1872_v48  ;;  %v2681_v43 = vand.u32 31, %v2679_v26  ;;  %3577 = vsinq.f32 %v1674_v52  ;;  %v1778_v20 = vsel %vm5370_vm8, %v6050_v36, %v1775_v25 }
 0x1d0   : > { %v1777_v41 = vsel %vm1692_vm2, %v6054_v1, %v5065_v6  ;;  %v1869_v7 = vor.u32 %v1868_v2, %v1867_v9  ;;  %vm2512_vm12 = vc.u32 %v5395_v53, %v5385_v51  ;;  %v1970_v55 = vsub.s32 32, %v1969_v3 }
 0x1d1   : > { %v1975_v27 = vadd.s32 127, %v1974_v13  ;;  %v2514_v58 = vsel %vm2512_vm12, %v2513_v23, %v5386_v17  ;;  %v2682_v11 = vsub.s32 32, %v2681_v43  ;;  %v1954_v5 = vadd.s32 %v5194_v4, %v5192_v60 }
 0x1d2   : > { %v2515_v6 = vadd.s32 %v2514_v58, %v2510_v28  ;;  %v2674_v42 = vand.u32 8388607, %v2667_v10  ;;  %v2693_v37 = vshll.u32 %v6021_v30, %v2681_v43  ;;  %v1874_v32 = vand.u32 2147483647, %v1873_v45 }
 0x1d3   : > { %v5419_v31 = vshrl.u32 %v2679_v26, 5  ;;  %v2684_v54 = vshll.u32 %v6007_v22, %v2681_v43  ;;  %v2687_v48 = vshll.u32 %v5991_v8, %v2681_v43  ;;  %v2685_v17 = vshrl.u32 %v5991_v8, %v2682_v11 }
 0x1d4   : > { %v2516_v21 = vadd.s32 536870912, %v2515_v6  ;;  %v2688_v50 = vshrl.u32 %v5993_v62, %v2682_v11  ;;  %v2694_v60 = vshrl.u32 %v6020_v40, %v2682_v11  ;;  %v1972_v4 = vshrl.u32 %v1954_v5, %v1970_v55 }
 0x1d5   : > { %v1976_v15 = vshll.u32 %v1975_v27, 23  ;;  %v2690_v52 = vshll.u32 %v5993_v62, %v2681_v43  ;;  %v2691_v2 = vshrl.u32 %v6021_v30, %v2682_v11  ;;  %v1876_v0 = vcvt.s32.f32 %v1869_v7 }
 0x1d6   : > { %v5428_v25 = vshrl.u32 %v2516_v21, 30  ;;  %v2675_v9 = vor.u32 8388608, %v2674_v42  ;;  %v2695_v13 = vor.u32 %v2694_v60, %v2693_v37  ;;  %v1971_v28 = vshll.u32 %v5294_v44, %v1969_v3 }
 0x1d7   : > { %v2696_v23 = vshll.u32 %v6020_v40, %v2681_v43  ;;  %v2697_v8 = vshrl.u32 %v6022_v56, %v2682_v11  ;;  %vm2702_vm13 = vcmp.lt.s32.totalorder %v5419_v31, 4  ;;  %vm1796_vm14 = vcmp.lt.s32.totalorder %v4749_v57, 0 }
 0x1d8   : > { %v1877_v26 = vmul.f32 %v1876_v0, %v1874_v32  ;;  %v2518_v62 = vshll.u32 %v5428_v25, 30  ;;  %v2686_v1 = vor.u32 %v2685_v17, %v2684_v54  ;;  %v2689_v30 = vor.u32 %v2688_v50, %v2687_v48 }
 0x1d9   : > { %v1973_v45 = vor.u32 %v1972_v4, %v1971_v28  ;;  %v1977_v7 = vor.u32 4788187, %v1976_v15  ;;  %v2692_v55 = vor.u32 %v2691_v2, %v2690_v52  ;;  %vm2699_vm15 = vcmp.lt.s32.totalorder %v5419_v31, 1 }
 0x1da   : > { %v5437_v27 = vsub.s32 %v2515_v6, %v2518_v62  ;;  %v2683_v40 = vshrl.u32 %v6007_v22, %v2682_v11  ;;  %vm2701_vm1 = vcmp.lt.s32.totalorder %v5419_v31, 3  ;;  %v2708_v56 = vsel %vm2702_vm13, %v2695_v13, 920167782 }
 0x1db   : > { %v5445_v44 = vsel %vm5370_vm8, 0, %v1777_v41  ;;  %3579 = vcosq.f32 %v1778_v20  ;;  %v2698_v3 = vor.u32 %v2697_v8, %v2696_v23  ;;  %v5447_v43 = vshll.u32 %v2675_v9, 8  ;;  %v5449_v58 = vpop.eup %3575 }
 0x1dc   : > { %v6055_v5 = vand.u32 2147483647, %v4749_v57  ;;  %v2521_v22 = vsub.s32 0, %v5437_v27  ;;  %vm2700_vm4 = vcmp.lt.s32.totalorder %v5419_v31, 2  ;;  %v2704_v61 = vsel %vm2702_vm13, %v2692_v55, 2102212464  ;;  %v5463_v11 = vpop.eup %3577 }
 0x1dd   : > { %v2707_v41 = vsel %vm2699_vm15, %v2686_v1, %v2689_v30  ;;  %3581 = vsinq.f32 %v1778_v20  ;;  %v1878_v42 = vxor.u32 2147483648, %v1877_v26  ;;  %v1880_v37 = vsub.s32 4, %v5186_v19 }
 0x1de   : > { %vm5453_vm3 = vcmp.le.f32.partialorder %v6055_v5, 0.7853982  ;;  %v2709_v32 = vsel %vm2701_vm1, %v2692_v55, %v2708_v56  ;;  %v1978_v54 = vand.u32 2147483647, %v1977_v7  ;;  %v1980_v48 = vcvt.s32.f32 %v1973_v45 }
 0x1df   : > { %v3398_v21 = vmin.u32 %v2521_v22, %v5437_v27  ;;  %v2703_v17 = vsel %vm2699_vm15, %v2683_v40, %v2686_v1  ;;  %v2705_v50 = vsel %vm2701_vm1, %v2689_v30, %v2704_v61  ;;  %v2710_v60 = vsel %vm2700_vm4, %v2707_v41, %v2709_v32 }
 0x1e0   : > { %v2711_v20 = vsel %vm2699_vm15, %v2689_v30, %v2692_v55  ;;  %v2712_v4 = vsel %vm2702_vm13, %v2698_v3, 1326507024  ;;  %v5482_v2 = vmul.u32.u64.low %v5447_v43, %v2710_v60  ;;  %v5483_v0 = vmul.u32.u64.high %v5447_v43, %v2710_v60, %v5482_v2 }
 0x1e1   : > { %v2523_v15 = vclz %v3398_v21  ;;  %v2713_v52 = vsel %vm2701_vm1, %v2695_v13, %v2712_v4  ;;  %vm1682_vm0 = vcmp.eq.s32.totalorder %v5341_v47, 0  ;;  %vm1685_vm2 = vcmp.eq.s32.totalorder %v5341_v47, 2 }
 0x1e2   : > { %v1783_v9 = vadd.s32 3, %v5445_v44  ;;  %v1879_v28 = vsel %vm1796_vm14, %v1878_v42, %v1877_v26  ;;  %vm1900_vm6 = vcmp.lt.s32.totalorder %v4945_v14, 0  ;;  %v1981_v23 = vmul.f32 %v1980_v48, %v1978_v54 }
 0x1e3   : > { %v3399_v8 = vadd.s32 4294967294, %v2523_v15  ;;  %v2706_v13 = vsel %vm2700_vm4, %v2703_v17, %v2705_v50  ;;  %v2714_v62 = vsel %vm2700_vm4, %v2711_v20, %v2713_v52  ;;  %vm1681_vm7 = vcmp.lt.s32.totalorder %v5341_v47, 2 }
 0x1e4   : > { %v1881_v1 = vsel %vm1796_vm14, %v1880_v37, %v5186_v19  ;;  %3583 = vrcp.f32 %v6041_v63  ;;  %v5502_v26 = vmul.u32.u64.low %v5447_v43, %v2714_v62  ;;  %v5503_v30 = vmul.u32.u64.high %v5447_v43, %v2714_v62, %v5502_v26 }
 0x1e5   : > { %v1686_v45 = vxor.u32 2147483648, %v5449_v58  ;;  %v2511_v7 = vadd.s32 %v5385_v51, %v5395_v53  ;;  %vm3400_vm5 = vcmp.lt.s32.totalorder %v3399_v8, 0  ;;  %v2725_v31 = vadd.s32 1, %v5483_v0 }
 0x1e6   : > { %v1683_v55 = vxor.u32 2147483648, %v5463_v11  ;;  %v1882_v19 = vsel %vm5453_vm3, %v4749_v57, %v1879_v28  ;;  %v2526_v40 = vsel %vm3400_vm5, 0, %v3399_v8  ;;  %v2722_v56 = vmul.u32 %v5447_v43, %v2706_v13 }
 0x1e7   : > { %vm1678_vm10 = vweird.f32 %v6041_v63  ;;  %v1982_v3 = vxor.u32 2147483648, %v1981_v23  ;;  %v2527_v5 = vsub.s32 32, %v2526_v40  ;;  %v2528_v22 = vshll.u32 %v5437_v27, %v2526_v40 }
 0x1e8   : > { %v2531_v61 = vsub.s32 4294967266, %v2526_v40  ;;  %v5516_v51 = vand.u32 3, %v1783_v9  ;;  %v5520_v53 = vsel %vm5453_vm3, 0, %v1881_v1  ;;  %v2107_v41 = vand.u32 3, %v5301_v49  ;;  %v5525_v42 = vpop.eup %3579 }
 0x1e9   : > { %vm2724_vm8 = vc.u32 %v5503_v30, %v5482_v2  ;;  %3585 = vcosq.f32 %v1882_v19  ;;  %v2529_v43 = vshrl.u32 %v2511_v7, %v2527_v5  ;;  %v1684_v27 = vsel %vm1682_vm0, %v5449_v58, %v1683_v55 }
 0x1ea   : > { %v2532_v37 = vadd.s32 127, %v2531_v61  ;;  %v2726_v32 = vsel %vm2724_vm8, %v2725_v31, %v5483_v0  ;;  %v1687_v49 = vsel %vm1685_vm2, %v1686_v45, %v5463_v11  ;;  %3587 = vsinq.f32 %v1882_v19  ;;  %v5536_v54 = vpop.eup %3581 }
 0x1eb   : > { %v2727_v6 = vadd.s32 %v2726_v32, %v2722_v56  ;;  %v1887_v48 = vadd.s32 3, %v5520_v53  ;;  %v1983_v21 = vsel %vm1900_vm6, %v1982_v3, %v1981_v23  ;;  %v2530_v17 = vor.u32 %v2529_v43, %v2528_v22 }
 0x1ec   : > { %v2533_v50 = vshll.u32 %v2532_v37, 23  ;;  %v5543_v60 = vmul.f32 %v5323_v38, %v5348_v39  ;;  %vm1786_vm9 = vcmp.eq.s32.totalorder %v5516_v51, 0  ;;  %v6058_v20 = vand.u32 2147483647, %v4945_v14 }
 0x1ed   : > { %v2728_v15 = vadd.s32 536870912, %v2727_v6  ;;  %v1688_v52 = vsel %vm1681_vm7, %v1684_v27, %v1687_v49  ;;  %3589 = vrcp.f32 %v6050_v36  ;;  %v2537_v9 = vcvt.s32.f32 %v2530_v17 }
 0x1ee   : > { %vm5548_vm11 = vcmp.le.f32.partialorder %v6058_v20, 0.7853982  ;;  %v2534_v0 = vor.u32 4788187, %v2533_v50  ;;  %vm1785_vm12 = vcmp.lt.s32.totalorder %v5516_v51, 2  ;;  %vm1789_vm13 = vcmp.eq.s32.totalorder %v5516_v51, 2 }
 0x1ef   : > { %v1986_v38 = vsel %vm5548_vm11, %v4945_v14, %v1983_v21  ;;  %3591 = vrcp.f32 %v4749_v57  ;;  %v5561_v39 = vshrl.u32 %v2728_v15, 30  ;;  %v5563_v28 = vand.u32 3, %v1887_v48 }
 0x1f0   : > { %3593 = vrcp.f32 %v4945_v14  ;;  %vm2109_vm14 = vcmp.eq.s32.totalorder %v2107_v41, 0  ;;  %v2535_v47 = vand.u32 2147483647, %v2534_v0  ;;  %v1689_v23 = vsel %vm1678_vm10, nan, %v1688_v52 }
 0x1f1   : > { %v1787_v8 = vxor.u32 2147483648, %v5536_v54  ;;  %v1790_v13 = vxor.u32 2147483648, %v5525_v42  ;;  %v2730_v62 = vshll.u32 %v5561_v39, 30  ;;  %v5571_v1 = vpop.eup %3583  ;;  %vm1782_vm15 = vweird.f32 %v6050_v36 }
 0x1f2   : > { %v1984_v26 = vsub.s32 4, %v5258_v33  ;;  %3595 = vcosq.f32 %v1986_v38  ;;  %v2111_v7 = vsel %vm2109_vm14, %v5449_v58, %v1683_v55  ;;  %v2538_v31 = vmul.f32 %v2537_v9, %v2535_v47 }
 0x1f3   : > { %3597 = vsinq.f32 %v1986_v38  ;;  %vm2112_vm1 = vcmp.eq.s32.totalorder %v2107_v41, 2  ;;  %vm2457_vm3 = vcmp.lt.s32.totalorder %v5260_v46, 0  ;;  %v5577_v19 = vsub.s32 %v2727_v6, %v2730_v62 }
 0x1f4   : > { %v2114_v40 = vsel %vm2112_vm1, %v1686_v45, %v5463_v11  ;;  %v2210_v56 = vand.u32 3, %v5445_v44  ;;  %v6061_v3 = vand.u32 2147483647, %v5260_v46  ;;  %v2539_v55 = vxor.u32 2147483648, %v2538_v31 }
 0x1f5   : > { %v1788_v22 = vsel %vm1786_vm9, %v5525_v42, %v1787_v8  ;;  %v1791_v61 = vsel %vm1789_vm13, %v1790_v13, %v5536_v54  ;;  %vm2108_vm0 = vcmp.lt.s32.totalorder %v2107_v41, 2  ;;  %v2733_v58 = vsub.s32 0, %v5577_v19 }
 0x1f6   : > { %vm5585_vm4 = vcmp.le.f32.partialorder %v6061_v3, 0.7853982  ;;  %vm1890_vm2 = vcmp.eq.s32.totalorder %v5563_v28, 0  ;;  %v1985_v44 = vsel %vm1900_vm6, %v1984_v26, %v5258_v33  ;;  %v5601_v11 = vmul.f32 %v5571_v1, %v1689_v23  ;;  %v5605_v43 = vpop.eup %3585 }
 0x1f7   : > { %v2540_v45 = vsel %vm2457_vm3, %v2539_v55, %v2538_v31  ;;  %v2115_v37 = vsel %vm2108_vm0, %v2111_v7, %v2114_v40  ;;  %v5608_v32 = vand.u32 3, %v5520_v53  ;;  %v3407_v27 = vmin.u32 %v2733_v58, %v5577_v19  ;;  %v3588_v49 = vpop.eup %3587 }
 0x1f8   : > { %v2543_v41 = vsel %vm5585_vm4, %v5260_v46, %v2540_v45  ;;  %v1792_v33 = vsel %vm1785_vm12, %v1788_v22, %v1791_v61  ;;  %vm2212_vm6 = vcmp.eq.s32.totalorder %v2210_v56, 0  ;;  %vm2215_vm7 = vcmp.eq.s32.totalorder %v2210_v56, 2 }
 0x1f9   : > { %3599 = vcosq.f32 %v2543_v41  ;;  %vm1889_vm5 = vcmp.lt.s32.totalorder %v5563_v28, 2  ;;  %v1987_v6 = vsel %vm5548_vm11, 0, %v1985_v44  ;;  %v2541_v53 = vsub.s32 4, %v5428_v25 }
 0x1fa   : > { %3601 = vsinq.f32 %v2543_v41  ;;  %v2735_v48 = vclz %v3407_v27  ;;  %vm1893_vm8 = vcmp.eq.s32.totalorder %v5563_v28, 2  ;;  %v1894_v21 = vxor.u32 2147483648, %v5605_v43  ;;  %v5624_v50 = vpop.eup %3589 }
 0x1fb   : > { %v2214_v17 = vsel %vm2212_vm6, %v5525_v42, %v1787_v8  ;;  %v2217_v51 = vsel %vm2215_vm7, %v1790_v13, %v5536_v54  ;;  %v1793_v20 = vsel %vm1782_vm15, nan, %v1792_v33  ;;  %v1891_v15 = vxor.u32 2147483648, %v3588_v49 }
 0x1fc   : > { %v2116_v4 = vsel %vm1678_vm10, nan, %v2115_v37  ;;  %v3408_v52 = vadd.s32 4294967294, %v2735_v48  ;;  %v5630_v0 = vpop.eup %3591  ;;  %vm1886_vm9 = vweird.f32 %v4749_v57  ;;  %v1991_v9 = vadd.s32 3, %v1987_v6 }
 0x1fd   : > { %vm2211_vm11 = vcmp.lt.s32.totalorder %v2210_v56, 2  ;;  %vm2315_vm12 = vcmp.eq.s32.totalorder %v5608_v32, 0  ;;  %v2426_v42 = vsub.f32 %v5601_v11, %v2116_v4  ;;  %v5635_v54 = vpop.eup %3593  ;;  %v2542_v47 = vsel %vm2457_vm3, %v2541_v53, %v5428_v25 }
 0x1fe   : > { %v2218_v38 = vsel %vm2211_vm11, %v2214_v17, %v2217_v51  ;;  %v2723_v63 = vadd.s32 %v5482_v2, %v5503_v30  ;;  %vm3409_vm10 = vcmp.lt.s32.totalorder %v3408_v52, 0  ;;  %v1895_v23 = vsel %vm1893_vm8, %v1894_v21, %v3588_v49 }
 0x1ff   : > { %v5645_v8 = vmul.f32 %v5624_v50, %v1793_v20  ;;  %v5647_v13 = vand.u32 3, %v1987_v6  ;;  %v2738_v62 = vsel %vm3409_vm10, 0, %v3408_v52  ;;  %v3596_v26 = vpop.eup %3595  ;;  %v1892_v7 = vsel %vm1890_vm2, %v5605_v43, %v1891_v15 }
 0x200   : > { %vm2314_vm13 = vcmp.lt.s32.totalorder %v5608_v32, 2  ;;  %v2739_v25 = vsub.s32 32, %v2738_v62  ;;  %v2740_v2 = vshll.u32 %v5577_v19, %v2738_v62  ;;  %v2743_v30 = vsub.s32 4294967266, %v2738_v62  ;;  %v3598_v31 = vpop.eup %3597 }
 0x201   : > { %v1992_v40 = vand.u32 3, %v1991_v9  ;;  %vm2318_vm14 = vcmp.eq.s32.totalorder %v5608_v32, 2  ;;  %v5656_v56 = vmul.f32 %v5571_v1, %v2426_v42  ;;  %v2544_v3 = vsel %vm5585_vm4, 0, %v2542_v47 }
 0x202   : > { %v5662_v55 = vsel %vm1782_vm15, nan, %v2218_v38  ;;  %v2548_v22 = vand.u32 3, %v2544_v3  ;;  %v2741_v61 = vshrl.u32 %v2723_v63, %v2739_v25  ;;  %v2744_v58 = vadd.s32 127, %v2743_v30 }
 0x203   : > { %v1896_v19 = vsel %vm1889_vm5, %v1892_v7, %v1895_v23  ;;  %v1998_v44 = vxor.u32 2147483648, %v3596_v26  ;;  %v2427_v45 = vsub.f32 %v5645_v8, %v5662_v55  ;;  %vm2547_vm1 = vweird.f32 %v5260_v46 }
 0x204   : > { %v1995_v37 = vxor.u32 2147483648, %v3598_v31  ;;  %vm2418_vm3 = vcmp.eq.s32.totalorder %v5647_v13, 0  ;;  %v2742_v5 = vor.u32 %v2741_v61, %v2740_v2  ;;  %v2745_v41 = vshll.u32 %v2744_v58, 23  ;;  %v6066_v58 = vld [vmem:[#allocation5_spill] sm:$0xff] }
 0x205   : > { %vm1990_vm15 = vweird.f32 %v4945_v14  ;;  %vm1997_vm4 = vcmp.eq.s32.totalorder %v1992_v40, 2  ;;  %v2317_v36 = vsel %vm2315_vm12, %v5605_v43, %v1891_v15  ;;  %v2320_v28 = vsel %vm2318_vm14, %v1894_v21, %v3588_v49 }
 0x206   : > { %vm2421_vm0 = vcmp.eq.s32.totalorder %v5647_v13, 2  ;;  %v5677_v27 = vpop.eup %3599  ;;  %v1897_v33 = vsel %vm1886_vm9, nan, %v1896_v19  ;;  %vm2553_vm2 = vcmp.eq.s32.totalorder %v2548_v22, 2  ;;  %v2746_v6 = vor.u32 4788187, %v2745_v41 }
 0x207   : > { %v2749_v53 = vcvt.s32.f32 %v2742_v5  ;;  %v5681_v48 = vpop.eup %3601  ;;  %vm1994_vm6 = vcmp.eq.s32.totalorder %v1992_v40, 0  ;;  %v1999_v17 = vsel %vm1997_vm4, %v1998_v44, %v3598_v31  ;;  %vm2550_vm7 = vcmp.eq.s32.totalorder %v2548_v22, 0  ;;  %v6068_v5 = vld [vmem:[#allocation7_spill] sm:$0xff] }
 0x208   : > { %v2554_v43 = vxor.u32 2147483648, %v5677_v27  ;;  %v1996_v51 = vsel %vm1994_vm6, %v3596_v26, %v1995_v37  ;;  %vm2549_vm5 = vcmp.lt.s32.totalorder %v2548_v22, 2  ;;  %v2551_v49 = vxor.u32 2147483648, %v5681_v48 }
 0x209   : > { %v2747_v21 = vand.u32 2147483647, %v2746_v6  ;;  %vm1993_vm8 = vcmp.lt.s32.totalorder %v1992_v40, 2  ;;  %v5686_v20 = vmul.f32 %v5630_v0, %v1897_v33  ;;  %v2321_v15 = vsel %vm2314_vm13, %v2317_v36, %v2320_v28  ;;  %v6069_v36 = vld [vmem:[#allocation9_spill] sm:$0xff] }
 0x20a   : > { %v2555_v4 = vsel %vm2553_vm2, %v2554_v43, %v5681_v48  ;;  %v2552_v52 = vsel %vm2550_vm7, %v5677_v27, %v2551_v49  ;;  %vm2669_vm11 = vcmp.lt.s32.totalorder %v5332_v29, 0  ;;  %v2753_v42 = vsub.s32 4, %v5561_v39 }
 0x20b   : > { %v2750_v9 = vmul.f32 %v2749_v53, %v2747_v21  ;;  %v2000_v38 = vsel %vm1993_vm8, %v1996_v51, %v1999_v17  ;;  %v2420_v47 = vsel %vm2418_vm3, %v3596_v26, %v1995_v37  ;;  %v2423_v32 = vsel %vm2421_vm0, %v1998_v44, %v3598_v31  ;;  %v6067_v44 = vld [vmem:[#allocation6_spill] sm:$0xff] }
 0x20c   : > { %v2556_v63 = vsel %vm2549_vm5, %v2552_v52, %v2555_v4  ;;  %v2322_v23 = vsel %vm1886_vm9, nan, %v2321_v15  ;;  %vm5708_vm12 = vcmp.le.f32.partialorder %v2667_v10, 0.7853982  ;;  %vm2417_vm10 = vcmp.lt.s32.totalorder %v5647_v13, 2 }
 0x20d   : > { %v2557_v62 = vsel %vm2547_vm1, nan, %v2556_v63  ;;  %v2751_v25 = vxor.u32 2147483648, %v2750_v9  ;;  %v2428_v26 = vsub.f32 %v5686_v20, %v2322_v23  ;;  %v2001_v57 = vsel %vm1990_vm15, nan, %v2000_v38 }
 0x20e   : > { %v5714_v2 = vmul.f32 3.0, %v2557_v62  ;;  %v2881_v30 = vmul.f32 0.48860252, %v2557_v62  ;;  %v2424_v31 = vsel %vm2417_vm10, %v2420_v47, %v2423_v32  ;;  %v2754_v10 = vsel %vm2669_vm11, %v2753_v42, %v5561_v39 }
 0x20f   : > { %v2752_v40 = vsel %vm2669_vm11, %v2751_v25, %v2750_v9  ;;  %v2651_v22 = vadd.s32 3, %v2544_v3  ;;  %v2756_v39 = vsel %vm5708_vm12, 0, %v2754_v10  ;;  %v5735_v6 = vmul.f32 %v5635_v54, %v2001_v57 }
 0x210   : > { %v2663_v61 = vmul.f32 %v5714_v2, %v2557_v62  ;;  %v2755_v13 = vsel %vm5708_vm12, %v5332_v29, %v2752_v40  ;;  %v2903_v19 = vrot.slane %v2881_v30, %v6066_v58  ;;  %v2907_v37 = vrot.slane %v2881_v30, %v6067_v44 }
 0x211   : > { %3603 = vcosq.f32 %v2755_v13  ;;  %v2911_v41 = vrot.slane %v2881_v30, %v6068_v5  ;;  %v2915_v28 = vrot.slane %v2881_v30, %v6069_v36  ;;  %v2434_v21 = vmul.f32 3.0, %v5571_v1 }
 0x212   : > { %v3405_v33 = vadd.f32 -1.0, %v2663_v61  ;;  %3605 = vsinq.f32 %v2755_v13  ;;  %v2920_v3 = vmul.f32 %v2903_v19, %v5329_v34  ;;  %v2921_v53 = vmul.f32 %v2907_v37, %v5336_v35 }
 0x213   : > { %v2922_v17 = vmul.f32 %v2911_v41, %v5339_v18  ;;  %v2923_v51 = vmul.f32 %v2915_v28, %v5543_v60  ;;  %v2652_v15 = vand.u32 3, %v2651_v22  ;;  %v2864_v9 = vadd.s32 3, %v2756_v39 }
 0x214   : > { %v2665_v4 = vmul.f32 0.5, %v3405_v33  ;;  %v2928_v52 = vrot.slane %v2920_v3, 2  ;;  %v2929_v42 = vrot.slane %v2921_v53, 2  ;;  %v2425_v32 = vsel %vm1990_vm15, nan, %v2424_v31 }
 0x215   : > { %v2930_v38 = vrot.slane %v2922_v17, 2  ;;  %v2931_v47 = vrot.slane %v2923_v51, 2  ;;  %v2429_v23 = vsub.f32 %v5735_v6, %v2425_v32  ;;  %v2431_v1 = vmul.f32 %v5624_v50, %v2427_v45 }
 0x216   : > { %v2884_v63 = vmul.f32 0.63078314, %v2665_v4  ;;  %2936 = vst [vmem:[%s5313_s5 + $0x20] ss:$-28 sps:$4 sm:$0xcf] %v2928_v52   ;;  %v2432_v62 = vmul.f32 %v5630_v0, %v2428_v26  ;;  %v2438_v7 = vmul.f32 %v2434_v21, %v5656_v56  ;;  %vm2654_vm9 = vcmp.eq.s32.totalorder %v2652_v15, 0 }
 0x217   : > { %2937 = vst [vmem:[%s5313_s5 + $0x28] ss:$-28 sps:$4 sm:$0xcf] %v2929_v42   ;;  %2938 = vst [vmem:[%s5313_s5 + $0x30] ss:$-28 sps:$4 sm:$0xcf] %v2930_v38   ;;  %v2433_v61 = vmul.f32 %v5635_v54, %v2429_v23  ;;  %v2656_v13 = vsel %vm2654_vm9, %v5677_v27, %v2551_v49  ;;  %vm2759_vm7 = vweird.f32 %v5332_v29  ;;  %v2449_v42 = vpop.permute.xlu1 %2448 }
 0x218   : > { %2939 = vst [vmem:[%s5313_s5 + $0x38] ss:$-28 sps:$4 sm:$0xcf] %v2931_v47   ;;  %v3034_v25 = vrot.slane %v2884_v63, %v6066_v58  ;;  %v3038_v14 = vrot.slane %v2884_v63, %v6067_v44  ;;  %v3042_v30 = vrot.slane %v2884_v63, %v6068_v5  ;;  %v3046_v57 = vrot.slane %v2884_v63, %v6069_v36 }
 0x219   : > { %vm2657_vm13 = vcmp.eq.s32.totalorder %v2652_v15, 2  ;;  %v2760_v55 = vand.u32 3, %v2756_v39  ;;  %v2865_v45 = vand.u32 3, %v2864_v9  ;;  %v2435_v10 = vmul.f32 3.0, %v5624_v50 }
 0x21a   : > { %v3051_v56 = vmul.f32 %v3034_v25, %v5329_v34  ;;  %v3052_v26 = vmul.f32 %v3038_v14, %v5336_v35  ;;  %v3053_v31 = vmul.f32 %v3042_v30, %v5339_v18  ;;  %v3054_v40 = vmul.f32 %v3046_v57, %v5543_v60 }
 0x21b   : > { %v2436_v22 = vmul.f32 3.0, %v5630_v0  ;;  %vm2653_vm14 = vcmp.lt.s32.totalorder %v2652_v15, 2  ;;  %v2659_v19 = vsel %vm2657_vm13, %v2554_v43, %v5681_v48  ;;  %v2437_v37 = vmul.f32 3.0, %v5635_v54 }
 0x21c   : > { %3055 = vst [vmem:[%s5313_s5 + $0x60] sm:$0x3f] %v3051_v56  ;;  %3056 = vst [vmem:[%s5313_s5 + $0x68] sm:$0x3f] %v3052_v26  ;;  %v2439_v50 = vmul.f32 %v2435_v10, %v2431_v1  ;;  %v2442_v28 = vsub.f32 %v2438_v7, %v5601_v11  ;;  %vm2765_vm3 = vcmp.eq.s32.totalorder %v2760_v55, 2  ;;  %vm2870_vm15 = vcmp.eq.s32.totalorder %v2865_v45, 2 }
 0x21d   : > { %3057 = vst [vmem:[%s5313_s5 + $0x70] sm:$0x3f] %v3053_v31  ;;  %3058 = vst [vmem:[%s5313_s5 + $0x78] sm:$0x3f] %v3054_v40  ;;  %v2440_v0 = vmul.f32 %v2436_v22, %v2432_v62  ;;  %v2660_v39 = vsel %vm2653_vm14, %v2656_v13, %v2659_v19  ;;  %vm2762_vm4 = vcmp.eq.s32.totalorder %v2760_v55, 0  ;;  %vm2867_vm0 = vcmp.eq.s32.totalorder %v2865_v45, 0 }
 0x21e   : > { %v3604_v41 = vpop.eup %3603  ;;  %v2441_v27 = vmul.f32 %v2437_v37, %v2433_v61  ;;  %vm2761_vm2 = vcmp.lt.s32.totalorder %v2760_v55, 2  ;;  %vm2866_vm6 = vcmp.lt.s32.totalorder %v2865_v45, 2  ;;  %v2443_v43 = vsub.f32 %v2439_v50, %v5645_v8 }
 0x21f   : > { %v3606_v33 = vpop.eup %3605  ;;  %v2766_v49 = vxor.u32 2147483648, %v3604_v41  ;;  %v2444_v53 = vsub.f32 %v2440_v0, %v5686_v20  ;;  %v2661_v11 = vsel %vm2547_vm1, nan, %v2660_v39  ;;  %v5783_v47 = vmul.f32 %v2449_v42, %v2442_v28 }
 0x220   : > { %v2763_v48 = vxor.u32 2147483648, %v3606_v33  ;;  %v2445_v4 = vsub.f32 %v2441_v27, %v5735_v6  ;;  %v5785_v29 = vmul.f32 %v2449_v42, %v2443_v43  ;;  %v2666_v46 = vmul.f32 -1.0, %v5714_v2 }
 0x221   : > { %v2767_v54 = vsel %vm2765_vm3, %v2766_v49, %v3606_v33  ;;  %v2872_v3 = vsel %vm2870_vm15, %v2766_v49, %v3606_v33  ;;  %v5787_v32 = vmul.f32 %v2449_v42, %v2444_v53 }
 0x222   : > { %v2764_v17 = vsel %vm2762_vm4, %v3604_v41, %v2763_v48  ;;  %v2869_v51 = vsel %vm2867_vm0, %v3604_v41, %v2763_v48  ;;  %v5790_v62 = vmul.f32 %v2449_v42, %v2445_v4 }
 0x223   : > { %v2768_v21 = vsel %vm2761_vm2, %v2764_v17, %v2767_v54  ;;  %v2873_v15 = vsel %vm2866_vm6, %v2869_v51, %v2872_v3 }
 0x224   : > { %v2769_v52 = vsel %vm2759_vm7, nan, %v2768_v21  ;;  %v2874_v9 = vsel %vm2759_vm7, nan, %v2873_v15 }
 0x225   : > { %v2770_v38 = vmul.f32 %v2769_v52, %v2661_v11  ;;  %v2875_v8 = vmul.f32 %v2874_v9, %v2661_v11 }
 0x227   : > { %v2876_v20 = vmul.f32 %v2770_v38, %v2770_v38  ;;  %v2877_v63 = vmul.f32 %v2875_v8, %v2875_v8  ;;  %v2879_v23 = vmul.f32 %v2875_v8, %v2770_v38  ;;  %v2882_v1 = vmul.f32 -0.48860252, %v2770_v38 }
 0x228   : > { %v2883_v6 = vmul.f32 -0.48860252, %v2875_v8  ;;  %v2885_v7 = vmul.f32 0.3641828, %v2770_v38  ;;  %v2889_v25 = vmul.f32 0.3641828, %v2875_v8 }
 0x229   : > { %v2878_v14 = vsub.f32 %v2876_v20, %v2877_v63  ;;  %v2880_v30 = vadd.f32 %v2879_v23, %v2879_v23  ;;  %v2948_v57 = vrot.slane %v2882_v1, %v6066_v58  ;;  %v2952_v55 = vrot.slane %v2882_v1, %v6067_v44 }
 0x22a   : > { %v2886_v45 = vmul.f32 %v2885_v7, %v2666_v46  ;;  %v5794_v56 = vmul.f32 %v2889_v25, %v2666_v46  ;;  %v2956_v2 = vrot.slane %v2882_v1, %v6068_v5  ;;  %v2960_v26 = vrot.slane %v2882_v1, %v6069_v36 }
 0x22b   : > { %v2887_v31 = vmul.f32 0.54627424, %v2878_v14  ;;  %v5798_v40 = vmul.f32 0.54627424, %v2880_v30  ;;  %v2965_v10 = vmul.f32 %v2948_v57, %v5783_v47  ;;  %v2966_v22 = vmul.f32 %v2952_v55, %v5785_v29 }
 0x22c   : > { %v2967_v61 = vmul.f32 %v2956_v2, %v5787_v32  ;;  %v2968_v13 = vmul.f32 %v2960_v26, %v5790_v62  ;;  %v2993_v19 = vrot.slane %v2883_v6, %v6066_v58  ;;  %v2997_v37 = vrot.slane %v2883_v6, %v6067_v44 }
 0x22d   : > { %v2973_v50 = vrot.slane %v2965_v10, 4  ;;  %v2974_v41 = vrot.slane %v2966_v22, 4  ;;  %v3001_v0 = vrot.slane %v2883_v6, %v6068_v5  ;;  %v3005_v28 = vrot.slane %v2883_v6, %v6069_v36 }
 0x22e   : > { %v2975_v33 = vrot.slane %v2967_v61, 4  ;;  %v2976_v39 = vrot.slane %v2968_v13, 4  ;;  %v3010_v49 = vmul.f32 %v2993_v19, %v6047_v16  ;;  %v3011_v27 = vmul.f32 %v2997_v37, %v6048_v12 }
 0x22f   : > { %2981 = vst [vmem:[%s5313_s5 + $0x40] ss:$-28 sps:$4 sm:$0xf3] %v2973_v50   ;;  %2982 = vst [vmem:[%s5313_s5 + $0x48] ss:$-28 sps:$4 sm:$0xf3] %v2974_v41   ;;  %v3012_v48 = vmul.f32 %v3001_v0, %v6049_v24  ;;  %v3013_v43 = vmul.f32 %v3005_v28, %v5028_v59  ;;  %v3063_v54 = vrot.slane %v2886_v45, %v6066_v58 }
 0x230   : > { %v3067_v3 = vrot.slane %v2886_v45, %v6067_v44  ;;  %2983 = vst [vmem:[%s5313_s5 + $0x50] ss:$-28 sps:$4 sm:$0xf3] %v2975_v33   ;;  %2984 = vst [vmem:[%s5313_s5 + $0x58] ss:$-28 sps:$4 sm:$0xf3] %v2976_v39   ;;  %v3071_v17 = vrot.slane %v2886_v45, %v6068_v5  ;;  %v3075_v51 = vrot.slane %v2886_v45, %v6069_v36 }
 0x231   : > { %v3018_v53 = vrot.slane %v3010_v49, 6  ;;  %v3019_v11 = vrot.slane %v3011_v27, 6  ;;  %v3020_v21 = vrot.slane %v3012_v48, 6  ;;  %v3021_v15 = vrot.slane %v3013_v43, 6 }
 0x232   : > { %v3080_v4 = vmul.f32 %v3063_v54, %v5783_v47  ;;  %v3081_v52 = vmul.f32 %v3067_v3, %v5785_v29  ;;  %v3082_v9 = vmul.f32 %v3071_v17, %v5787_v32  ;;  %v3083_v42 = vmul.f32 %v3075_v51, %v5790_v62 }
 0x233   : > { %3026 = vst [vmem:[%s5313_s5 + $0x40] sm:$0xfc] %v3018_v53  ;;  %3027 = vst [vmem:[%s5313_s5 + $0x48] sm:$0xfc] %v3019_v11  ;;  %v3108_v38 = vrot.slane %v2887_v31, %v6066_v58  ;;  %v3112_v8 = vrot.slane %v2887_v31, %v6067_v44  ;;  %v3116_v63 = vrot.slane %v2887_v31, %v6068_v5 }
 0x234   : > { %3028 = vst [vmem:[%s5313_s5 + $0x50] sm:$0xfc] %v3020_v21  ;;  %3029 = vst [vmem:[%s5313_s5 + $0x58] sm:$0xfc] %v3021_v15  ;;  %v3088_v46 = vrot.slane %v3080_v4, 2  ;;  %v3089_v20 = vrot.slane %v3081_v52, 2  ;;  %v3120_v23 = vrot.slane %v2887_v31, %v6069_v36  ;;  %v3153_v57 = vrot.slane %v5798_v40, %v6066_v58 }
 0x235   : > { %v3090_v1 = vrot.slane %v3082_v9, 2  ;;  %v3091_v6 = vrot.slane %v3083_v42, 2  ;;  %v3125_v7 = vmul.f32 %v3108_v38, %v6047_v16  ;;  %v3126_v25 = vmul.f32 %v3112_v8, %v6048_v12 }
 0x236   : > { %3096 = vst [vmem:[%s5313_s5 + $0x80] ss:$-28 sps:$4 sm:$0xcf] %v3088_v46   ;;  %3097 = vst [vmem:[%s5313_s5 + $0x88] ss:$-28 sps:$4 sm:$0xcf] %v3089_v20   ;;  %v3127_v14 = vmul.f32 %v3116_v63, %v6049_v24  ;;  %v3128_v30 = vmul.f32 %v3120_v23, %v5028_v59  ;;  %v3157_v55 = vrot.slane %v5798_v40, %v6067_v44 }
 0x237   : > { %3098 = vst [vmem:[%s5313_s5 + $0x90] ss:$-28 sps:$4 sm:$0xcf] %v3090_v1   ;;  %3099 = vst [vmem:[%s5313_s5 + $0x98] ss:$-28 sps:$4 sm:$0xcf] %v3091_v6   ;;  %v3161_v45 = vrot.slane %v5798_v40, %v6068_v5  ;;  %v3165_v24 = vrot.slane %v5798_v40, %v6069_v36  ;;  %v3170_v26 = vmul.f32 %v3153_v57, %v5329_v34 }
 0x238   : > { %v3133_v16 = vrot.slane %v3125_v7, 4  ;;  %v3134_v12 = vrot.slane %v3126_v25, 4  ;;  %v3135_v59 = vrot.slane %v3127_v14, 4  ;;  %v3136_v2 = vrot.slane %v3128_v30, 4 }
 0x239   : > { %v3171_v31 = vmul.f32 %v3157_v55, %v5336_v35  ;;  %v3172_v10 = vmul.f32 %v3161_v45, %v5339_v18  ;;  %v3173_v22 = vmul.f32 %v3165_v24, %v5543_v60  ;;  %v3194_v61 = vrot.slane %v5794_v56, %v6066_v58 }
 0x23a   : > { %3141 = vst [vmem:[%s5313_s5 + $0xa0] ss:$-28 sps:$4 sm:$0xf3] %v3133_v16   ;;  %3142 = vst [vmem:[%s5313_s5 + $0xa8] ss:$-28 sps:$4 sm:$0xf3] %v3134_v12   ;;  %v3198_v40 = vrot.slane %v5794_v56, %v6067_v44  ;;  %v3202_v18 = vrot.slane %v5794_v56, %v6068_v5  ;;  %v3206_v60 = vrot.slane %v5794_v56, %v6069_v36 }
 0x23b   : > { %3143 = vst [vmem:[%s5313_s5 + $0xb0] ss:$-28 sps:$4 sm:$0xf3] %v3135_v59   ;;  %3144 = vst [vmem:[%s5313_s5 + $0xb8] ss:$-28 sps:$4 sm:$0xf3] %v3136_v2   ;;  %v3211_v13 = vmul.f32 %v3194_v61, %v5783_v47 }
 0x23c   : > { %v3178_v34 = vrot.slane %v3170_v26, 6  ;;  %v3179_v35 = vrot.slane %v3171_v31, 6  ;;  %v3180_v58 = vrot.slane %v3172_v10, 6  ;;  %v3181_v44 = vrot.slane %v3173_v22, 6 }
 0x23d   : > { %v3212_v19 = vmul.f32 %v3198_v40, %v5785_v29  ;;  %v3213_v5 = vmul.f32 %v3202_v18, %v5787_v32  ;;  %v3214_v36 = vmul.f32 %v3206_v60, %v5790_v62  ;;  %3215 = vst [vmem:[%s5313_s5 + $0xc0] sm:$0x3f] %v3211_v13 }
 0x23e   : > { %3186 = vst [vmem:[%s5313_s5 + $0xa0] sm:$0xfc] %v3178_v34  ;;  %3187 = vst [vmem:[%s5313_s5 + $0xa8] sm:$0xfc] %v3179_v35 }
 0x23f   : > { %3188 = vst [vmem:[%s5313_s5 + $0xb0] sm:$0xfc] %v3180_v58  ;;  %3189 = vst [vmem:[%s5313_s5 + $0xb8] sm:$0xfc] %v3181_v44 }
 0x240   : > { %3216 = vst [vmem:[%s5313_s5 + $0xc8] sm:$0x3f] %v3212_v19  ;;  %3217 = vst [vmem:[%s5313_s5 + $0xd0] sm:$0x3f] %v3213_v5 }
 0x241   : > { %3218 = vst [vmem:[%s5313_s5 + $0xd8] sm:$0x3f] %v3214_v36 }
 0x242   : > { %3620 = shalt.err (!%p3617_p3)
}
 0x243   : > { %s3621_s27 = scalar_lea.hbm %s5869_s12, 3584  ;;  %s3625_s30 = scalar_lea.hbm %s5931_s4, 7168 }
 0x244   : > { %p3622_p4 = scmp.ne.s32.totalorder %s5869_s12, %s3621_s27  ;;  %p3626_p9 = scmp.lt.s32.totalorder %s5869_s12, %s5931_s4 }
 0x245   : > { %p3627_p10 = scmp.lt.s32.totalorder %s3625_s30, %s3621_s27 }
 0x246   : > { %p3623_p7 = pnand %p3622_p4, %p3743_p5 }
 0x247   : > { %p3628_p11 = por %p3627_p10, %p3626_p9 }
 0x248   : > { %p3624_p8 = pneg %p3623_p7 }
 0x24a   : > { %p3629_p12 = pnand %p3628_p11, %p3624_p8 }
 0x24c   : > { %3632 = shalt.err (!%p3629_p12)
}
 0x24d   : > { %s3677_s7 = smov 512   ;;  %s3678_s8 = smov 1024  }
 0x24e   : > { %s3679_s9 = smov 32  }
 0x24f   : > { %3476 = dma.vmem_to_hbm [thread:$0]  (%p3743_p5), %s5873_s10, 3584, %s5869_s12, %s5887_s13, %s3677_s7, %s3678_s8, %s3679_s9  }
 0x250 PF: > { %p3482_p13 = scmp.ge.s32.totalorder %s3667_s18, 2  ;;  %s3248_s19 = sand.u32 1, %s3655_s15  }
 0x251   : > { %s3249_s11 = scalar_lea.sflag [#allocation3], %s3248_s19 }
 0x252   : > { %p3479_p0 = pnand %p3482_p13, %p3747_p6 }
 0x254   : > { %p3480_p1 = pneg %p3479_p0 }
 0x256   : > { %3650 = dma.done.wait (%p3480_p1), %s3249_s11, 3584  }
 0x257   : > { %3652 = vsyncadd (%p3480_p1), %s3249_s11, 4294963712  ;;  %p14_p2 = scmp.ge.s32.totalorder %s3730_s21, 4   ;;  %s6070_s15 = smov %s3659_s16 }
 0x258   : > { %s6071_s16 = smov %s3663_s17  ;;  %s6072_s17 = smov %s3741_s24 }
 0x259   : > { %s6073_s18 = smov %s3730_s21  ;;  %16 = sbr.rel (!%p14_p2) target bundleno = 3 (0x3), region = 77 }
 0x25e   :  { %3254 = vsyncpa [#allocation3], 1 }
 0x25f   :  { %3256 = vsyncpa [#allocation3 + $0x1], 1 }

</bundles_post_ra>
